<compile_context>
chip_gen: v7x
topology: tpu7x:2x2x1
jax: 0.10.0
libtpu: 0.0.40
codegen_flags: <defaults>
</compile_context>

<pallas_src>
import functools

import jax
import jax.numpy as jnp
from jax import lax
from jax.experimental import pallas as pl
from jax.experimental.pallas import tpu as pltpu

EPS = 1e-5
DIMS = [(784, 500), (500, 200), (200, 60), (60, 10)]
PADDED = {784: 784, 500: 512, 200: 256, 60: 128, 10: 128}

_FUSED_MAX_ROWS = 512     # whole batch in one fused kernel up to this many rows
_TILE_TARGET = 512        # target rows per tile for the tiled path (sweep 512-1024)

_COMPILER_PARAMS = pltpu.CompilerParams(
    dimension_semantics=("parallel",),          # batch tiles are independent
    vmem_limit_bytes=32 * 1024 * 1024,          # safe headroom on every gen
)


def _round_up(n, m):
    return ((n + m - 1) // m) * m


def _cdiv(a, b):
    return -(-a // b)


def _plan(batch):
    """Return (padded_batch, tile_rows, num_tiles)."""
    bp8 = _round_up(max(batch, 8), 8)
    if bp8 <= _FUSED_MAX_ROWS:
        return bp8, bp8, 1                       # fused single-call path
    nt = max(2, _cdiv(bp8, _TILE_TARGET))        # >=2 tiles (dual-TC on v7x)
    tb = _round_up(_cdiv(bp8, nt), 16)           # minimal padding, bf16-friendly
    return nt * tb, tb, nt


# ----------------------------------------------------------------------------
# Kernels
# ----------------------------------------------------------------------------
def _linear_stats_kernel(x_ref, w_ref, h_ref, s_ref, q_ref):
    """h = bf16(x) @ w (MXU, f32 acc); store h as bf16; f32 per-tile stats.

    Padded batch rows of x are exactly zero and there is no bias, so they
    contribute 0 to the sums -> no masking needed here."""
    h = jnp.dot(x_ref[...].astype(jnp.bfloat16), w_ref[...],
                preferred_element_type=jnp.float32)
    h_ref[...] = h.astype(jnp.bfloat16)
    s_ref[...] = jnp.broadcast_to(jnp.sum(h, axis=0, keepdims=True), s_ref.shape)
    q_ref[...] = jnp.broadcast_to(jnp.sum(h * h, axis=0, keepdims=True), q_ref.shape)


def _bn_relu_linear_stats_kernel(h_ref, sc_ref, sh_ref, w_ref,
                                 o_ref, s_ref, q_ref, *, tb, rows, masked):
    """a = relu(h*scale + shift) (f32); o = bf16(a) @ w; bf16 o, f32 stats."""
    a = jnp.maximum(h_ref[...].astype(jnp.float32) * sc_ref[...] + sh_ref[...], 0.0)
    o = jnp.dot(a.astype(jnp.bfloat16), w_ref[...],
                preferred_element_type=jnp.float32)
    o_ref[...] = o.astype(jnp.bfloat16)
    if masked:  # trace-time skip when the batch needs no padding
        rid = pl.program_id(0) * tb + lax.broadcasted_iota(jnp.int32, (tb, 1), 0)
        o = jnp.where(rid < rows, o, 0.0)        # stats only: drop padded rows
    s_ref[...] = jnp.broadcast_to(jnp.sum(o, axis=0, keepdims=True), s_ref.shape)
    q_ref[...] = jnp.broadcast_to(jnp.sum(o * o, axis=0, keepdims=True), q_ref.shape)


def _bn_relu_linear_bias_kernel(h_ref, sc_ref, sh_ref, w_ref, b_ref, o_ref):
    """Final layer: a = relu(h*scale + shift); o = bf16(a) @ w + b (f32)."""
    a = jnp.maximum(h_ref[...].astype(jnp.float32) * sc_ref[...] + sh_ref[...], 0.0)
    o_ref[...] = (jnp.dot(a.astype(jnp.bfloat16), w_ref[...],
                          preferred_element_type=jnp.float32) + b_ref[...])


def _fused_mlp_kernel(x_ref, w1_ref, w2_ref, w3_ref, w4_ref,
                      g1_ref, be1_ref, g2_ref, be2_ref, g3_ref, be3_ref,
                      b4_ref, o_ref, *, rows):
    """Whole net in one kernel: valid when the full batch fits one tile."""
    bp = x_ref.shape[0]
    inv_n = jnp.float32(1.0 / rows)
    valid = None
    if bp != rows:  # trace-time skip when no batch padding
        valid = lax.broadcasted_iota(jnp.int32, (bp, 1), 0) < rows

    def bn_relu(h, g_ref, be_ref):
        hs = h if valid is None else jnp.where(valid, h, 0.0)
        mu = jnp.sum(hs, axis=0, keepdims=True) * inv_n
        var = jnp.maximum(jnp.sum(hs * hs, axis=0, keepdims=True) * inv_n - mu * mu, 0.0)
        scale = g_ref[...] * lax.rsqrt(var + EPS)
        shift = be_ref[...] - mu * scale
        return jnp.maximum(h * scale + shift, 0.0)

    h = jnp.dot(x_ref[...].astype(jnp.bfloat16), w1_ref[...],
                preferred_element_type=jnp.float32)
    a = bn_relu(h, g1_ref, be1_ref)
    h = jnp.dot(a.astype(jnp.bfloat16), w2_ref[...], preferred_element_type=jnp.float32)
    a = bn_relu(h, g2_ref, be2_ref)
    h = jnp.dot(a.astype(jnp.bfloat16), w3_ref[...], preferred_element_type=jnp.float32)
    a = bn_relu(h, g3_ref, be3_ref)
    o_ref[...] = (jnp.dot(a.astype(jnp.bfloat16), w4_ref[...],
                          preferred_element_type=jnp.float32) + b4_ref[...])


# ----------------------------------------------------------------------------
# pallas_call wrappers
# ----------------------------------------------------------------------------
def _call_linear_stats(x, w, tb):
    bp, din = x.shape
    dout = w.shape[1]
    nt = bp // tb
    return pl.pallas_call(
        _linear_stats_kernel,
        grid=(nt,),
        in_specs=[pl.BlockSpec((tb, din), lambda i: (i, 0)),
                  pl.BlockSpec((din, dout), lambda i: (0, 0))],
        out_specs=(pl.BlockSpec((tb, dout), lambda i: (i, 0)),
                   pl.BlockSpec((8, dout), lambda i: (i, 0)),
                   pl.BlockSpec((8, dout), lambda i: (i, 0))),
        out_shape=(jax.ShapeDtypeStruct((bp, dout), jnp.bfloat16),
                   jax.ShapeDtypeStruct((nt * 8, dout), jnp.float32),
                   jax.ShapeDtypeStruct((nt * 8, dout), jnp.float32)),
        compiler_params=_COMPILER_PARAMS,
    )(x, w)


def _call_bn_linear_stats(h, scale, shift, w, tb, rows, masked):
    bp, din = h.shape
    dout = w.shape[1]
    nt = bp // tb
    kernel = functools.partial(_bn_relu_linear_stats_kernel,
                               tb=tb, rows=rows, masked=masked)
    return pl.pallas_call(
        kernel,
        grid=(nt,),
        in_specs=[pl.BlockSpec((tb, din), lambda i: (i, 0)),
                  pl.BlockSpec((1, din), lambda i: (0, 0)),
                  pl.BlockSpec((1, din), lambda i: (0, 0)),
                  pl.BlockSpec((din, dout), lambda i: (0, 0))],
        out_specs=(pl.BlockSpec((tb, dout), lambda i: (i, 0)),
                   pl.BlockSpec((8, dout), lambda i: (i, 0)),
                   pl.BlockSpec((8, dout), lambda i: (i, 0))),
        out_shape=(jax.ShapeDtypeStruct((bp, dout), jnp.bfloat16),
                   jax.ShapeDtypeStruct((nt * 8, dout), jnp.float32),
                   jax.ShapeDtypeStruct((nt * 8, dout), jnp.float32)),
        compiler_params=_COMPILER_PARAMS,
    )(h, scale, shift, w)


def _call_bn_linear_bias(h, scale, shift, w, b, tb):
    bp, din = h.shape
    dout = w.shape[1]
    nt = bp // tb
    return pl.pallas_call(
        _bn_relu_linear_bias_kernel,
        grid=(nt,),
        in_specs=[pl.BlockSpec((tb, din), lambda i: (i, 0)),
                  pl.BlockSpec((1, din), lambda i: (0, 0)),
                  pl.BlockSpec((1, din), lambda i: (0, 0)),
                  pl.BlockSpec((din, dout), lambda i: (0, 0)),
                  pl.BlockSpec((1, dout), lambda i: (0, 0))],
        out_specs=pl.BlockSpec((tb, dout), lambda i: (i, 0)),
        out_shape=jax.ShapeDtypeStruct((bp, dout), jnp.float32),
        compiler_params=_COMPILER_PARAMS,
    )(h, scale, shift, w, b)


def _call_fused(xp, pp, rows):
    bp = xp.shape[0]
    d1, d2, d3, d4 = PADDED[500], PADDED[200], PADDED[60], PADDED[10]
    kernel = functools.partial(_fused_mlp_kernel, rows=rows)
    full = lambda shape: pl.BlockSpec(shape, lambda i: (0, 0))
    return pl.pallas_call(
        kernel,
        grid=(1,),
        in_specs=[full((bp, 784)),
                  full((784, d1)), full((d1, d2)), full((d2, d3)), full((d3, d4)),
                  full((1, d1)), full((1, d1)),
                  full((1, d2)), full((1, d2)),
                  full((1, d3)), full((1, d3)),
                  full((1, d4))],
        out_specs=full((bp, d4)),
        out_shape=jax.ShapeDtypeStruct((bp, d4), jnp.float32),
        compiler_params=_COMPILER_PARAMS,
    )(xp, pp["w1"], pp["w2"], pp["w3"], pp["w4"],
      pp["g1"], pp["be1"], pp["g2"], pp["be2"], pp["g3"], pp["be3"], pp["b4"])


def _fold_bn(s_part, q_part, gamma, beta, n):
    """Fold full-batch BN stats into a single per-feature scale/shift (f32)."""
    s = s_part[::8].sum(axis=0, keepdims=True)          # one row per tile
    q = q_part[::8].sum(axis=0, keepdims=True)
    mu = s / n
    var = jnp.maximum(q / n - mu * mu, 0.0)              # biased variance
    scale = gamma * lax.rsqrt(var + EPS)
    shift = beta - mu * scale
    return scale, shift


# ----------------------------------------------------------------------------
# Forward
# ----------------------------------------------------------------------------
@jax.jit
def neuralnet_forward(x, pparams):
    """x: (..., 784) or (B,1,28,28) float32. pparams: pad_and_cast_params()."""
    x = x.reshape(-1, 784).astype(jnp.float32)           # the module's x.view(-1,784)
    B = x.shape[0]
    bp, tb, nt = _plan(B)
    xp = x if bp == B else jnp.pad(x, ((0, bp - B), (0, 0)))

    if nt == 1:                                           # fused small-batch path
        out = _call_fused(xp, pparams, B)
    else:                                                 # tiled big-batch path
        masked = bp != B
        h1, s1, q1 = _call_linear_stats(xp, pparams["w1"], tb)
        sc1, sh1 = _fold_bn(s1, q1, pparams["g1"], pparams["be1"], B)

        h2, s2, q2 = _call_bn_linear_stats(h1, sc1, sh1, pparams["w2"], tb, B, masked)
        sc2, sh2 = _fold_bn(s2, q2, pparams["g2"], pparams["be2"], B)

        h3, s3, q3 = _call_bn_linear_stats(h2, sc2, sh2, pparams["w3"], tb, B, masked)
        sc3, sh3 = _fold_bn(s3, q3, pparams["g3"], pparams["be3"], B)

        out = _call_bn_linear_bias(h3, sc3, sh3, pparams["w4"], pparams["b4"], tb)

    return out[:B, :10]


# ----------------------------------------------------------------------------
# Parameters
# ----------------------------------------------------------------------------
def init_params(key):
    """PyTorch-default-like init. Linear weights stored transposed (in, out)."""
    params = {}
    keys = jax.random.split(key, 2 * len(DIMS))
    for i, (fin, fout) in enumerate(DIMS):
        bound = 1.0 / (fin ** 0.5)
        params[f"w{i + 1}"] = jax.random.uniform(
            keys[2 * i], (fin, fout), jnp.float32, minval=-bound, maxval=bound)
        params[f"b{i + 1}"] = jax.random.uniform(
            keys[2 * i + 1], (fout,), jnp.float32, minval=-bound, maxval=bound)
    for i, (_, fout) in enumerate(DIMS[:3]):
        params[f"g{i + 1}"] = jnp.ones((fout,), jnp.float32)
        params[f"be{i + 1}"] = jnp.zeros((fout,), jnp.float32)
    return params


def pad_and_cast_params(params):
    """Zero-pad feature dims to lane multiples; cast weights to bf16.

    b1..b3 are dropped: a bias added right before train-mode BatchNorm is
    exactly cancelled by the mean subtraction. gamma/beta are padded with
    zeros so padded lanes stay exactly zero through BN/ReLU."""
    pp = {}
    for i, (fin, fout) in enumerate(DIMS):
        pin, pout = PADDED[fin], PADDED[fout]
        w = params[f"w{i + 1}"]
        pp[f"w{i + 1}"] = jnp.pad(
            w, ((0, pin - fin), (0, pout - fout))).astype(jnp.bfloat16)
    pout = PADDED[DIMS[-1][1]]
    pp["b4"] = jnp.pad(params["b4"], (0, pout - DIMS[-1][1])).reshape(1, -1)
    for i, (_, fout) in enumerate(DIMS[:3]):
        pout = PADDED[fout]
        pp[f"g{i + 1}"] = jnp.pad(params[f"g{i + 1}"], (0, pout - fout)).reshape(1, -1)
        pp[f"be{i + 1}"] = jnp.pad(params[f"be{i + 1}"], (0, pout - fout)).reshape(1, -1)
    return pp


# ----------------------------------------------------------------------------
# Reference.  Mathematically identical to the PyTorch train-mode forward
# (Dropout p=0 is the identity; biases before train-mode BN cancel exactly),
# but mirrors the kernel's MXU numerics: bf16 matmul inputs / f32 accumulation,
# and (when bf16_h=True) bf16 rounding of the HBM intermediates h1/h2/h3.
# ----------------------------------------------------------------------------
def reference_forward(x, params, *, bf16_h):
    n = x.shape[0]

    def dot_bf16(a, w):
        return jnp.dot(a.astype(jnp.bfloat16), w.astype(jnp.bfloat16),
                       preferred_element_type=jnp.float32)

    def layer(a, w, g, be):
        h = dot_bf16(a, w)
        mu = jnp.sum(h, axis=0, keepdims=True) / n
        var = jnp.maximum(jnp.sum(h * h, axis=0, keepdims=True) / n - mu * mu, 0.0)
        scale = g * lax.rsqrt(var + EPS)
        shift = be - mu * scale
        h_apply = h.astype(jnp.bfloat16).astype(jnp.float32) if bf16_h else h
        return jnp.maximum(h_apply * scale + shift, 0.0)

    a = layer(x, params["w1"], params["g1"], params["be1"])
    a = layer(a, params["w2"], params["g2"], params["be2"])
    a = layer(a, params["w3"], params["g3"], params["be3"])
    return dot_bf16(a, params["w4"]) + params["b4"]


if __name__ == "__main__":
    key = jax.random.PRNGKey(0)
    k_x1, k_x2, k_p = jax.random.split(key, 3)

    params = init_params(k_p)
    pparams = pad_and_cast_params(params)

    # 1) Small batch (the module's (B,1,28,28) MNIST input) -> fused VMEM path.
    B = 8
    x_img = jax.random.normal(k_x1, (B, 1, 28, 28), jnp.float32)
    out = jax.block_until_ready(neuralnet_forward(x_img, pparams))
    ref = reference_forward(x_img.reshape(-1, 784), params, bf16_h=False)
    assert out.shape == (B, 10)
    err = float(jnp.max(jnp.abs(out - ref)))
    assert jnp.allclose(out, ref, atol=2e-3, rtol=2e-3), (
        f"fused path mismatch vs reference, max abs err = {err}")

    # 2) Larger batch -> tiled multi-call path (adaptive tiles, bf16
    #    intermediates, padded-row masking).
    B2 = 600
    x2 = jax.random.normal(k_x2, (B2, 784), jnp.float32)
    out2 = jax.block_until_ready(neuralnet_forward(x2, pparams))
    ref2 = reference_forward(x2, params, bf16_h=True)
    assert out2.shape == (B2, 10)
    err2 = float(jnp.max(jnp.abs(out2 - ref2)))
    assert jnp.allclose(out2, ref2, atol=5e-3, rtol=5e-3), (
        f"tiled path mismatch vs reference, max abs err = {err2}")

    print("KERNEL_OK")
</pallas_src>

<mosaic_0001>
module attributes {stable_mosaic.version = 11 : i64} {
  func.func @_fused_mlp_kernel(%arg0: i32, %arg1: memref<8x784xf32, #tpu.memory_space<vmem>>, %arg2: memref<784x512xbf16, #tpu.memory_space<vmem>>, %arg3: memref<512x256xbf16, #tpu.memory_space<vmem>>, %arg4: memref<256x128xbf16, #tpu.memory_space<vmem>>, %arg5: memref<128x128xbf16, #tpu.memory_space<vmem>>, %arg6: memref<1x512xf32, #tpu.memory_space<vmem>>, %arg7: memref<1x512xf32, #tpu.memory_space<vmem>>, %arg8: memref<1x256xf32, #tpu.memory_space<vmem>>, %arg9: memref<1x256xf32, #tpu.memory_space<vmem>>, %arg10: memref<1x128xf32, #tpu.memory_space<vmem>>, %arg11: memref<1x128xf32, #tpu.memory_space<vmem>>, %arg12: memref<1x128xf32, #tpu.memory_space<vmem>>, %arg13: memref<8x128xf32, #tpu.memory_space<vmem>>) attributes {dimension_semantics = [#tpu.dimension_semantics<parallel>], iteration_bounds = array<i64: 1>, scalar_prefetch = 0 : i64, scratch_operands = 0 : i64, tpu.core_type = #tpu.core_type<tc>, window_params = [{pipeline_mode = #tpu.pipeline_mode<synchronous>, transform_indices = @transform_0, window_bounds = array<i64: 8, 784>}, {pipeline_mode = #tpu.pipeline_mode<synchronous>, transform_indices = @transform_1, window_bounds = array<i64: 784, 512>}, {pipeline_mode = #tpu.pipeline_mode<synchronous>, transform_indices = @transform_2, window_bounds = array<i64: 512, 256>}, {pipeline_mode = #tpu.pipeline_mode<synchronous>, transform_indices = @transform_3, window_bounds = array<i64: 256, 128>}, {pipeline_mode = #tpu.pipeline_mode<synchronous>, transform_indices = @transform_4, window_bounds = array<i64: 128, 128>}, {pipeline_mode = #tpu.pipeline_mode<synchronous>, transform_indices = @transform_5, window_bounds = array<i64: 1, 512>}, {pipeline_mode = #tpu.pipeline_mode<synchronous>, transform_indices = @transform_6, window_bounds = array<i64: 1, 512>}, {pipeline_mode = #tpu.pipeline_mode<synchronous>, transform_indices = @transform_7, window_bounds = array<i64: 1, 256>}, {pipeline_mode = #tpu.pipeline_mode<synchronous>, transform_indices = @transform_8, window_bounds = array<i64: 1, 256>}, {pipeline_mode = #tpu.pipeline_mode<synchronous>, transform_indices = @transform_9, window_bounds = array<i64: 1, 128>}, {pipeline_mode = #tpu.pipeline_mode<synchronous>, transform_indices = @transform_10, window_bounds = array<i64: 1, 128>}, {pipeline_mode = #tpu.pipeline_mode<synchronous>, transform_indices = @transform_11, window_bounds = array<i64: 1, 128>}, {pipeline_mode = #tpu.pipeline_mode<synchronous>, transform_indices = @transform_12, window_bounds = array<i64: 8, 128>}]} {
    %c0 = arith.constant 0 : index
    %c0_0 = arith.constant 0 : index
    %0 = vector.load %arg1[%c0, %c0_0] : memref<8x784xf32, #tpu.memory_space<vmem>>, vector<8x784xf32>
    %1 = arith.truncf %0 : vector<8x784xf32> to vector<8x784xbf16>
    %c0_1 = arith.constant 0 : index
    %c0_2 = arith.constant 0 : index
    %2 = vector.load %arg2[%c0_1, %c0_2] : memref<784x512xbf16, #tpu.memory_space<vmem>>, vector<784x512xbf16>
    %cst = arith.constant dense<0.000000e+00> : vector<8x512xf32>
    %3 = tpu.matmul %1, %2, %cst {dimension_numbers = #tpu.dot_dimension_numbers<[1], [0], [0], [1], [0, 0, 1, 1], [], []>} : vector<8x784xbf16>, vector<784x512xbf16>, vector<8x512xf32> -> vector<8x512xf32>
    %cst_3 = arith.constant dense<0.000000e+00> : vector<512xf32>
    %4 = vector.multi_reduction <add>, %3, %cst_3 [0] : vector<8x512xf32> to vector<512xf32>
    %5 = vector.shape_cast %4 : vector<512xf32> to vector<1x512xf32>
    %cst_4 = arith.constant 1.250000e-01 : f32
    %6 = vector.broadcast %cst_4 : f32 to vector<1x512xf32>
    %7 = arith.mulf %5, %6 : vector<1x512xf32>
    %8 = arith.mulf %3, %3 : vector<8x512xf32>
    %cst_5 = arith.constant dense<0.000000e+00> : vector<512xf32>
    %9 = vector.multi_reduction <add>, %8, %cst_5 [0] : vector<8x512xf32> to vector<512xf32>
    %10 = vector.shape_cast %9 : vector<512xf32> to vector<1x512xf32>
    %cst_6 = arith.constant 1.250000e-01 : f32
    %11 = vector.broadcast %cst_6 : f32 to vector<1x512xf32>
    %12 = arith.mulf %10, %11 : vector<1x512xf32>
    %13 = arith.mulf %7, %7 : vector<1x512xf32>
    %14 = arith.subf %12, %13 : vector<1x512xf32>
    %cst_7 = arith.constant 0.000000e+00 : f32
    %15 = vector.broadcast %cst_7 : f32 to vector<1x512xf32>
    %16 = arith.maximumf %14, %15 : vector<1x512xf32>
    %c0_8 = arith.constant 0 : index
    %c0_9 = arith.constant 0 : index
    %17 = vector.load %arg6[%c0_8, %c0_9] : memref<1x512xf32, #tpu.memory_space<vmem>>, vector<1x512xf32>
    %cst_10 = arith.constant 9.99999974E-6 : f32
    %18 = vector.broadcast %cst_10 : f32 to vector<1x512xf32>
    %19 = arith.addf %16, %18 : vector<1x512xf32>
    %20 = math.rsqrt %19 : vector<1x512xf32>
    %21 = arith.mulf %17, %20 : vector<1x512xf32>
    %c0_11 = arith.constant 0 : index
    %c0_12 = arith.constant 0 : index
    %22 = vector.load %arg7[%c0_11, %c0_12] : memref<1x512xf32, #tpu.memory_space<vmem>>, vector<1x512xf32>
    %23 = arith.mulf %7, %21 : vector<1x512xf32>
    %24 = arith.subf %22, %23 : vector<1x512xf32>
    %25 = vector.broadcast %21 : vector<1x512xf32> to vector<8x512xf32>
    %26 = arith.mulf %3, %25 : vector<8x512xf32>
    %27 = vector.broadcast %24 : vector<1x512xf32> to vector<8x512xf32>
    %28 = arith.addf %26, %27 : vector<8x512xf32>
    %cst_13 = arith.constant 0.000000e+00 : f32
    %29 = vector.broadcast %cst_13 : f32 to vector<8x512xf32>
    %30 = arith.maximumf %28, %29 : vector<8x512xf32>
    %31 = arith.truncf %30 : vector<8x512xf32> to vector<8x512xbf16>
    %c0_14 = arith.constant 0 : index
    %c0_15 = arith.constant 0 : index
    %32 = vector.load %arg3[%c0_14, %c0_15] : memref<512x256xbf16, #tpu.memory_space<vmem>>, vector<512x256xbf16>
    %cst_16 = arith.constant dense<0.000000e+00> : vector<8x256xf32>
    %33 = tpu.matmul %31, %32, %cst_16 {dimension_numbers = #tpu.dot_dimension_numbers<[1], [0], [0], [1], [0, 0, 1, 1], [], []>} : vector<8x512xbf16>, vector<512x256xbf16>, vector<8x256xf32> -> vector<8x256xf32>
    %cst_17 = arith.constant dense<0.000000e+00> : vector<256xf32>
    %34 = vector.multi_reduction <add>, %33, %cst_17 [0] : vector<8x256xf32> to vector<256xf32>
    %35 = vector.shape_cast %34 : vector<256xf32> to vector<1x256xf32>
    %cst_18 = arith.constant 1.250000e-01 : f32
    %36 = vector.broadcast %cst_18 : f32 to vector<1x256xf32>
    %37 = arith.mulf %35, %36 : vector<1x256xf32>
    %38 = arith.mulf %33, %33 : vector<8x256xf32>
    %cst_19 = arith.constant dense<0.000000e+00> : vector<256xf32>
    %39 = vector.multi_reduction <add>, %38, %cst_19 [0] : vector<8x256xf32> to vector<256xf32>
    %40 = vector.shape_cast %39 : vector<256xf32> to vector<1x256xf32>
    %cst_20 = arith.constant 1.250000e-01 : f32
    %41 = vector.broadcast %cst_20 : f32 to vector<1x256xf32>
    %42 = arith.mulf %40, %41 : vector<1x256xf32>
    %43 = arith.mulf %37, %37 : vector<1x256xf32>
    %44 = arith.subf %42, %43 : vector<1x256xf32>
    %cst_21 = arith.constant 0.000000e+00 : f32
    %45 = vector.broadcast %cst_21 : f32 to vector<1x256xf32>
    %46 = arith.maximumf %44, %45 : vector<1x256xf32>
    %c0_22 = arith.constant 0 : index
    %c0_23 = arith.constant 0 : index
    %47 = vector.load %arg8[%c0_22, %c0_23] : memref<1x256xf32, #tpu.memory_space<vmem>>, vector<1x256xf32>
    %cst_24 = arith.constant 9.99999974E-6 : f32
    %48 = vector.broadcast %cst_24 : f32 to vector<1x256xf32>
    %49 = arith.addf %46, %48 : vector<1x256xf32>
    %50 = math.rsqrt %49 : vector<1x256xf32>
    %51 = arith.mulf %47, %50 : vector<1x256xf32>
    %c0_25 = arith.constant 0 : index
    %c0_26 = arith.constant 0 : index
    %52 = vector.load %arg9[%c0_25, %c0_26] : memref<1x256xf32, #tpu.memory_space<vmem>>, vector<1x256xf32>
    %53 = arith.mulf %37, %51 : vector<1x256xf32>
    %54 = arith.subf %52, %53 : vector<1x256xf32>
    %55 = vector.broadcast %51 : vector<1x256xf32> to vector<8x256xf32>
    %56 = arith.mulf %33, %55 : vector<8x256xf32>
    %57 = vector.broadcast %54 : vector<1x256xf32> to vector<8x256xf32>
    %58 = arith.addf %56, %57 : vector<8x256xf32>
    %cst_27 = arith.constant 0.000000e+00 : f32
    %59 = vector.broadcast %cst_27 : f32 to vector<8x256xf32>
    %60 = arith.maximumf %58, %59 : vector<8x256xf32>
    %61 = arith.truncf %60 : vector<8x256xf32> to vector<8x256xbf16>
    %c0_28 = arith.constant 0 : index
    %c0_29 = arith.constant 0 : index
    %62 = vector.load %arg4[%c0_28, %c0_29] : memref<256x128xbf16, #tpu.memory_space<vmem>>, vector<256x128xbf16>
    %cst_30 = arith.constant dense<0.000000e+00> : vector<8x128xf32>
    %63 = tpu.matmul %61, %62, %cst_30 {dimension_numbers = #tpu.dot_dimension_numbers<[1], [0], [0], [1], [0, 0, 1, 1], [], []>} : vector<8x256xbf16>, vector<256x128xbf16>, vector<8x128xf32> -> vector<8x128xf32>
    %cst_31 = arith.constant dense<0.000000e+00> : vector<128xf32>
    %64 = vector.multi_reduction <add>, %63, %cst_31 [0] : vector<8x128xf32> to vector<128xf32>
    %65 = vector.shape_cast %64 : vector<128xf32> to vector<1x128xf32>
    %cst_32 = arith.constant 1.250000e-01 : f32
    %66 = vector.broadcast %cst_32 : f32 to vector<1x128xf32>
    %67 = arith.mulf %65, %66 : vector<1x128xf32>
    %68 = arith.mulf %63, %63 : vector<8x128xf32>
    %cst_33 = arith.constant dense<0.000000e+00> : vector<128xf32>
    %69 = vector.multi_reduction <add>, %68, %cst_33 [0] : vector<8x128xf32> to vector<128xf32>
    %70 = vector.shape_cast %69 : vector<128xf32> to vector<1x128xf32>
    %cst_34 = arith.constant 1.250000e-01 : f32
    %71 = vector.broadcast %cst_34 : f32 to vector<1x128xf32>
    %72 = arith.mulf %70, %71 : vector<1x128xf32>
    %73 = arith.mulf %67, %67 : vector<1x128xf32>
    %74 = arith.subf %72, %73 : vector<1x128xf32>
    %cst_35 = arith.constant 0.000000e+00 : f32
    %75 = vector.broadcast %cst_35 : f32 to vector<1x128xf32>
    %76 = arith.maximumf %74, %75 : vector<1x128xf32>
    %c0_36 = arith.constant 0 : index
    %c0_37 = arith.constant 0 : index
    %77 = vector.load %arg10[%c0_36, %c0_37] : memref<1x128xf32, #tpu.memory_space<vmem>>, vector<1x128xf32>
    %cst_38 = arith.constant 9.99999974E-6 : f32
    %78 = vector.broadcast %cst_38 : f32 to vector<1x128xf32>
    %79 = arith.addf %76, %78 : vector<1x128xf32>
    %80 = math.rsqrt %79 : vector<1x128xf32>
    %81 = arith.mulf %77, %80 : vector<1x128xf32>
    %c0_39 = arith.constant 0 : index
    %c0_40 = arith.constant 0 : index
    %82 = vector.load %arg11[%c0_39, %c0_40] : memref<1x128xf32, #tpu.memory_space<vmem>>, vector<1x128xf32>
    %83 = arith.mulf %67, %81 : vector<1x128xf32>
    %84 = arith.subf %82, %83 : vector<1x128xf32>
    %85 = vector.broadcast %81 : vector<1x128xf32> to vector<8x128xf32>
    %86 = arith.mulf %63, %85 : vector<8x128xf32>
    %87 = vector.broadcast %84 : vector<1x128xf32> to vector<8x128xf32>
    %88 = arith.addf %86, %87 : vector<8x128xf32>
    %cst_41 = arith.constant 0.000000e+00 : f32
    %89 = vector.broadcast %cst_41 : f32 to vector<8x128xf32>
    %90 = arith.maximumf %88, %89 : vector<8x128xf32>
    %91 = arith.truncf %90 : vector<8x128xf32> to vector<8x128xbf16>
    %c0_42 = arith.constant 0 : index
    %c0_43 = arith.constant 0 : index
    %92 = vector.load %arg5[%c0_42, %c0_43] : memref<128x128xbf16, #tpu.memory_space<vmem>>, vector<128x128xbf16>
    %cst_44 = arith.constant dense<0.000000e+00> : vector<8x128xf32>
    %93 = tpu.matmul %91, %92, %cst_44 {dimension_numbers = #tpu.dot_dimension_numbers<[1], [0], [0], [1], [0, 0, 1, 1], [], []>} : vector<8x128xbf16>, vector<128x128xbf16>, vector<8x128xf32> -> vector<8x128xf32>
    %c0_45 = arith.constant 0 : index
    %c0_46 = arith.constant 0 : index
    %94 = vector.load %arg12[%c0_45, %c0_46] : memref<1x128xf32, #tpu.memory_space<vmem>>, vector<1x128xf32>
    %95 = vector.broadcast %94 : vector<1x128xf32> to vector<8x128xf32>
    %96 = arith.addf %93, %95 : vector<8x128xf32>
    %c0_47 = arith.constant 0 : index
    %c0_48 = arith.constant 0 : index
    %97 = vector.load %arg13[%c0_47, %c0_48] : memref<8x128xf32, #tpu.memory_space<vmem>>, vector<8x128xf32>
    tpu.vector_store %arg13[%c0_47, %c0_48], %96 {strides = array<i32>} : memref<8x128xf32, #tpu.memory_space<vmem>>, vector<8x128xf32>,
    return
  }
  func.func @transform_0(%arg0: i32) -> (i32, i32) {
    %c0_i32 = arith.constant 0 : i32
    %c0_i32_0 = arith.constant 0 : i32
    %c0_i32_1 = arith.constant 0 : i32
    return %c0_i32, %c0_i32_0 : i32, i32
  }
  func.func @transform_1(%arg0: i32) -> (i32, i32) {
    %c0_i32 = arith.constant 0 : i32
    %c0_i32_0 = arith.constant 0 : i32
    %c0_i32_1 = arith.constant 0 : i32
    return %c0_i32, %c0_i32_0 : i32, i32
  }
  func.func @transform_2(%arg0: i32) -> (i32, i32) {
    %c0_i32 = arith.constant 0 : i32
    %c0_i32_0 = arith.constant 0 : i32
    %c0_i32_1 = arith.constant 0 : i32
    return %c0_i32, %c0_i32_0 : i32, i32
  }
  func.func @transform_3(%arg0: i32) -> (i32, i32) {
    %c0_i32 = arith.constant 0 : i32
    %c0_i32_0 = arith.constant 0 : i32
    %c0_i32_1 = arith.constant 0 : i32
    return %c0_i32, %c0_i32_0 : i32, i32
  }
  func.func @transform_4(%arg0: i32) -> (i32, i32) {
    %c0_i32 = arith.constant 0 : i32
    %c0_i32_0 = arith.constant 0 : i32
    %c0_i32_1 = arith.constant 0 : i32
    return %c0_i32, %c0_i32_0 : i32, i32
  }
  func.func @transform_5(%arg0: i32) -> (i32, i32) {
    %c0_i32 = arith.constant 0 : i32
    %c0_i32_0 = arith.constant 0 : i32
    %c0_i32_1 = arith.constant 0 : i32
    return %c0_i32, %c0_i32_0 : i32, i32
  }
  func.func @transform_6(%arg0: i32) -> (i32, i32) {
    %c0_i32 = arith.constant 0 : i32
    %c0_i32_0 = arith.constant 0 : i32
    %c0_i32_1 = arith.constant 0 : i32
    return %c0_i32, %c0_i32_0 : i32, i32
  }
  func.func @transform_7(%arg0: i32) -> (i32, i32) {
    %c0_i32 = arith.constant 0 : i32
    %c0_i32_0 = arith.constant 0 : i32
    %c0_i32_1 = arith.constant 0 : i32
    return %c0_i32, %c0_i32_0 : i32, i32
  }
  func.func @transform_8(%arg0: i32) -> (i32, i32) {
    %c0_i32 = arith.constant 0 : i32
    %c0_i32_0 = arith.constant 0 : i32
    %c0_i32_1 = arith.constant 0 : i32
    return %c0_i32, %c0_i32_0 : i32, i32
  }
  func.func @transform_9(%arg0: i32) -> (i32, i32) {
    %c0_i32 = arith.constant 0 : i32
    %c0_i32_0 = arith.constant 0 : i32
    %c0_i32_1 = arith.constant 0 : i32
    return %c0_i32, %c0_i32_0 : i32, i32
  }
  func.func @transform_10(%arg0: i32) -> (i32, i32) {
    %c0_i32 = arith.constant 0 : i32
    %c0_i32_0 = arith.constant 0 : i32
    %c0_i32_1 = arith.constant 0 : i32
    return %c0_i32, %c0_i32_0 : i32, i32
  }
  func.func @transform_11(%arg0: i32) -> (i32, i32) {
    %c0_i32 = arith.constant 0 : i32
    %c0_i32_0 = arith.constant 0 : i32
    %c0_i32_1 = arith.constant 0 : i32
    return %c0_i32, %c0_i32_0 : i32, i32
  }
  func.func @transform_12(%arg0: i32) -> (i32, i32) {
    %c0_i32 = arith.constant 0 : i32
    %c0_i32_0 = arith.constant 0 : i32
    %c0_i32_1 = arith.constant 0 : i32
    return %c0_i32, %c0_i32_0 : i32, i32
  }
}

</mosaic_0001>

<bundles_post_ra>
// kernel: neuralnet_forward.1
= control target key start
LH: loop header
LB: loop body
LE: loop exit
PB: predicated region body
PF: predicated region fallthrough
CT: control target
= control target key end

     0   :  { %17 = vsyncpa [#allocation3], 0  ;;  %s4029_s0 = inlined_call_operand.vmem [shape: f32[8,784], index: 0, kind: input, shape index: {}]   ;;  %s4030_s1 = inlined_call_operand.hbm [shape: bf16[784,512], index: 1, kind: input, shape index: {}]   ;;  %s4031_s2 = inlined_call_operand.vmem [shape: bf16[512,256], index: 2, kind: input, shape index: {}]   ;;  %s4032_s3 = inlined_call_operand.vmem [shape: bf16[256,128], index: 3, kind: input, shape index: {}]   ;;  %s4033_s4 = inlined_call_operand.vmem [shape: bf16[128,128], index: 4, kind: input, shape index: {}]   ;;  %s4034_s5 = inlined_call_operand.vmem [shape: f32[1,512], index: 5, kind: input, shape index: {}]   ;;  %s4035_s6 = inlined_call_operand.vmem [shape: f32[1,512], index: 6, kind: input, shape index: {}]   ;;  %s4036_s7 = inlined_call_operand.vmem [shape: f32[1,256], index: 7, kind: input, shape index: {}]   ;;  %s4037_s8 = inlined_call_operand.vmem [shape: f32[1,256], index: 8, kind: input, shape index: {}]   ;;  %s4038_s9 = inlined_call_operand.vmem [shape: f32[1,128], index: 9, kind: input, shape index: {}]   ;;  %s4039_s10 = inlined_call_operand.vmem [shape: f32[1,128], index: 10, kind: input, shape index: {}]   ;;  %s4040_s11 = inlined_call_operand.vmem [shape: f32[1,128], index: 11, kind: input, shape index: {}]   ;;  %s4041_s12 = inlined_call_operand.hbm [shape: f32[8,128], index: 12, kind: output, shape index: {}]  }
   0x1   :  { %18 = vsyncpa [#allocation4], 0  ;;  %s3545_s21 = smov [#allocation2]   ;;  %s3497_s25 = scalar_lea.hbm %s4030_s1, 25088 }
   0x2   :  { %s26_s22 = sshll.u32 %s3545_s21, 4  ;;  %p3498_p0 = scmp.ne.s32.totalorder %s4030_s1, %s3497_s25  ;;  %s27_s22 = int_to_ptr.vmem [resolvable:$true] %s26_s22 }
   0x3   :  { %p3501_p1 = scmp.lt.u32.totalorder %s3497_s25, %s4030_s1 }
   0x5   :  { %p3503_p2 = pnand %p3501_p1, %p3498_p0 }
   0x7   :  { %3506 = shalt.err (!%p3503_p2)
}
   0x8   :  { %s3507_s30 = scalar_lea.vmem %s27_s22, 25088  ;;  %p3512_p4 = scmp.lt.s32.totalorder %s27_s22, %s27_s22 }
   0x9   :  { %p3508_p3 = scmp.ne.s32.totalorder %s27_s22, %s3507_s30  ;;  %p3513_p5 = scmp.lt.s32.totalorder %s3507_s30, %s3507_s30 }
   0xb   :  { %p3514_p6 = por %p3513_p5, %p3512_p4 }
   0xd   :  { %p3515_p7 = pnand %p3514_p6, %p3508_p3 }
   0xf   :  { %3518 = shalt.err (!%p3515_p7)
}
  0x10   :  { %s3546_s13 = smov 256   ;;  %s3547_s14 = smov 16  }
  0x11   :  { %32 = dma.hbm_to_vmem [thread:$0]  %s4030_s1, 25088, %s27_s22, [#allocation3], %s3546_s13, %s3546_s13, %s3547_s14  }
  0x12   :  { %3541 = dma.done.wait [#allocation3], 25088  }
  0x13   :  { %3542 = vsyncadd [#allocation3], 4294942208  ;;  %v3548_v0 = vmov 0   ;;  %v3069_v1 = vld [vmem:[#allocation2 + $0x4] ss:$16 sps:$4 sm:$0xff]   ;;  %vm1247_vm0 = vcmask 130048  }
  0x14   :  { %1406 = vmatprep.mubr.bf16.mxu1 %v3548_v0  ;;  %v3071_v2 = vld [vmem:[#allocation2 + $0x604] ss:$16 sps:$4 sm:$0xff]   ;;  %1251 = vmatprep.subr.bf16.mxu0 %v3069_v1  ;;  %v3073_v3 = vld [vmem:[#allocation2] ss:$16 sps:$4 sm:$0xff]   ;;  %v3077_v8 = vld [vmem:[#allocation2 + $0x8] ss:$16 sps:$4 sm:$0xff]  }
  0x15   :  { %v3074_v4 = vld [vmem:[#allocation2 + $0x600] ss:$16 sps:$4 sm:$0xff]   ;;  %1374 = vmatprep.subr.bf16.mxu1 %v3071_v2  ;;  %v3075_v5 = vld [vmem:[#allocation2 + $0x24] ss:$16 sps:$4 sm:$0xff]   ;;  %1252 = vmatpush1.bf16.msra.mxu0 %v3073_v3  ;;  %v3079_v9 = vld [vmem:[#allocation2 + $0xc] ss:$16 sps:$4 sm:$0xff]  }
  0x16   :  { %v63_v6 = vld [vmem:[%s4029_s0 + $0x30] sm:$0xff]  ;;  %1375 = vmatpush1.bf16.msra.mxu1 %v3074_v4  ;;  %1253 = vmatprep.subr.bf16.mxu0 %v3075_v5  ;;  %v3083_v12 = vld [vmem:[#allocation2 + $0x28] ss:$16 sps:$4 sm:$0xff]   ;;  %v3085_v13 = vld [vmem:[#allocation2 + $0x2c] ss:$16 sps:$4 sm:$0xff]   ;;  %vm3551_vm1 = vmmov 0  }
  0x17   :  { %v3634_v7 = vpack.c.bf16 %v63_v6, %v63_v6  ;;  %v3080_v10 = vld [vmem:[#allocation2 + $0x20] ss:$16 sps:$4 sm:$0xff]   ;;  %v3081_v11 = vld [vmem:[#allocation2 + $0x44] ss:$16 sps:$4 sm:$0xff]   ;;  %1415 = vmatprep.subr.bf16.mxu1 %v3079_v9  ;;  %v3091_v16 = vld [vmem:[#allocation2 + $0x4c] ss:$16 sps:$4 sm:$0xff]  }
  0x18   :  { %v3086_v14 = vld [vmem:[#allocation2 + $0x40] ss:$16 sps:$4 sm:$0xff]   ;;  %v3087_v15 = vld [vmem:[#allocation2 + $0x64] ss:$16 sps:$4 sm:$0xff]   ;;  %v3089_v17 = vld [vmem:[#allocation2 + $0x48] ss:$16 sps:$4 sm:$0xff]  }
  0x19   :  { %2893 = vmatmul.mubr.msk.bf16.vlgmr.msra.gmra.mrb[0].mxu1 %vm1247_vm0, %v3634_v7  ;;  %1254 = vmatpush1.bf16.msra.mxu0 %v3080_v10  ;;  %v3092_v18 = vld [vmem:[#allocation2 + $0x60] ss:$16 sps:$4 sm:$0xff]   ;;  %v3093_v19 = vld [vmem:[#allocation2 + $0x84] ss:$16 sps:$4 sm:$0xff]   ;;  %v3097_v20 = vld [vmem:[#allocation2 + $0x6c] ss:$16 sps:$4 sm:$0xff]  }
  0x1a   :  { %1416 = vmatpush1.bf16.msra.mxu1 %v3077_v8  ;;  %1255 = vmatprep.subr.bf16.mxu0 %v3081_v11  ;;  %v3095_v21 = vld [vmem:[#allocation2 + $0x68] ss:$16 sps:$4 sm:$0xff]   ;;  %v3098_v22 = vld [vmem:[#allocation2 + $0x80] ss:$16 sps:$4 sm:$0xff]   ;;  %v3099_v23 = vld [vmem:[#allocation2 + $0xa4] ss:$16 sps:$4 sm:$0xff]  }
  0x1b   :  { %1417 = vmatprep.subr.bf16.mxu1 %v3085_v13  ;;  %v3103_v24 = vld [vmem:[#allocation2 + $0x8c] ss:$16 sps:$4 sm:$0xff]   ;;  %v3101_v25 = vld [vmem:[#allocation2 + $0x88] ss:$16 sps:$4 sm:$0xff]   ;;  %v3104_v26 = vld [vmem:[#allocation2 + $0xa0] ss:$16 sps:$4 sm:$0xff]  }
  0x1c   :  { %v3105_v27 = vld [vmem:[#allocation2 + $0xc4] ss:$16 sps:$4 sm:$0xff]   ;;  %v3109_v28 = vld [vmem:[#allocation2 + $0xac] ss:$16 sps:$4 sm:$0xff]   ;;  %v3107_v29 = vld [vmem:[#allocation2 + $0xa8] ss:$16 sps:$4 sm:$0xff]  }
  0x1d   :  { %1256 = vmatpush1.bf16.msra.mxu0 %v3086_v14  ;;  %v3110_v30 = vld [vmem:[#allocation2 + $0xc0] ss:$16 sps:$4 sm:$0xff]   ;;  %v3111_v31 = vld [vmem:[#allocation2 + $0xe4] ss:$16 sps:$4 sm:$0xff]   ;;  %v3115_v32 = vld [vmem:[#allocation2 + $0xcc] ss:$16 sps:$4 sm:$0xff]  }
  0x1e   :  { %1418 = vmatpush1.bf16.msra.mxu1 %v3083_v12  ;;  %1257 = vmatprep.subr.bf16.mxu0 %v3087_v15  ;;  %v3113_v33 = vld [vmem:[#allocation2 + $0xc8] ss:$16 sps:$4 sm:$0xff]   ;;  %v3116_v34 = vld [vmem:[#allocation2 + $0xe0] ss:$16 sps:$4 sm:$0xff]   ;;  %v3117_v35 = vld [vmem:[#allocation2 + $0x104] ss:$16 sps:$4 sm:$0xff]  }
  0x1f   :  { %1419 = vmatprep.subr.bf16.mxu1 %v3091_v16  ;;  %v3121_v36 = vld [vmem:[#allocation2 + $0xec] ss:$16 sps:$4 sm:$0xff]   ;;  %v3119_v37 = vld [vmem:[#allocation2 + $0xe8] ss:$16 sps:$4 sm:$0xff]   ;;  %v3122_v38 = vld [vmem:[#allocation2 + $0x100] ss:$16 sps:$4 sm:$0xff]  }
  0x20   :  { %v3123_v39 = vld [vmem:[#allocation2 + $0x124] ss:$16 sps:$4 sm:$0xff]   ;;  %v3127_v40 = vld [vmem:[#allocation2 + $0x10c] ss:$16 sps:$4 sm:$0xff]   ;;  %v3125_v41 = vld [vmem:[#allocation2 + $0x108] ss:$16 sps:$4 sm:$0xff]  }
  0x21   :  { %1258 = vmatpush1.bf16.msra.mxu0 %v3092_v18  ;;  %v3128_v42 = vld [vmem:[#allocation2 + $0x120] ss:$16 sps:$4 sm:$0xff]   ;;  %v3129_v43 = vld [vmem:[#allocation2 + $0x144] ss:$16 sps:$4 sm:$0xff]   ;;  %v3133_v44 = vld [vmem:[#allocation2 + $0x12c] ss:$16 sps:$4 sm:$0xff]  }
  0x22   :  { %1420 = vmatpush1.bf16.msra.mxu1 %v3089_v17  ;;  %1259 = vmatprep.subr.bf16.mxu0 %v3093_v19  ;;  %v3131_v45 = vld [vmem:[#allocation2 + $0x128] ss:$16 sps:$4 sm:$0xff]   ;;  %v3134_v46 = vld [vmem:[#allocation2 + $0x140] ss:$16 sps:$4 sm:$0xff]   ;;  %v3135_v47 = vld [vmem:[#allocation2 + $0x164] ss:$16 sps:$4 sm:$0xff]  }
  0x23   :  { %1421 = vmatprep.subr.bf16.mxu1 %v3097_v20  ;;  %v3139_v48 = vld [vmem:[#allocation2 + $0x14c] ss:$16 sps:$4 sm:$0xff]   ;;  %v3137_v50 = vld [vmem:[#allocation2 + $0x148] ss:$16 sps:$4 sm:$0xff]   ;;  %v3140_v51 = vld [vmem:[#allocation2 + $0x160] ss:$16 sps:$4 sm:$0xff]  }
  0x24   :  { %v58_v49 = vld [vmem:[%s4029_s0 + $0x8] sm:$0xff]  ;;  %v3141_v53 = vld [vmem:[#allocation2 + $0x184] ss:$16 sps:$4 sm:$0xff]   ;;  %v3146_v56 = vld [vmem:[#allocation2 + $0x180] ss:$16 sps:$4 sm:$0xff]  }
  0x25   :  { %1260 = vmatpush1.bf16.msra.mxu0 %v3098_v22  ;;  %v65_v52 = vpack.c.bf16 %v58_v49, %v58_v49  ;;  %v3145_v54 = vld [vmem:[#allocation2 + $0x16c] ss:$16 sps:$4 sm:$0xff]   ;;  %v3143_v55 = vld [vmem:[#allocation2 + $0x168] ss:$16 sps:$4 sm:$0xff]   ;;  %v3147_v57 = vld [vmem:[#allocation2 + $0x1a4] ss:$16 sps:$4 sm:$0xff]  }
  0x26   :  { %1422 = vmatpush1.bf16.msra.mxu1 %v3095_v21  ;;  %1261 = vmatprep.subr.bf16.mxu0 %v3099_v23  ;;  %v3151_v58 = vld [vmem:[#allocation2 + $0x18c] ss:$16 sps:$4 sm:$0xff]   ;;  %v3149_v59 = vld [vmem:[#allocation2 + $0x188] ss:$16 sps:$4 sm:$0xff]   ;;  %v3152_v60 = vld [vmem:[#allocation2 + $0x1a0] ss:$16 sps:$4 sm:$0xff]  }
  0x27   :  { %1423 = vmatprep.subr.bf16.mxu1 %v3103_v24  ;;  %1283 = vmatprep.mubr.bf16.mxu0 %v65_v52  ;;  %v3153_v61 = vld [vmem:[#allocation2 + $0x1c4] ss:$16 sps:$4 sm:$0xff]   ;;  %v3157_v62 = vld [vmem:[#allocation2 + $0x1ac] ss:$16 sps:$4 sm:$0xff]   ;;  %v3155_v63 = vld [vmem:[#allocation2 + $0x1a8] ss:$16 sps:$4 sm:$0xff]  }
  0x28   :  { %1447 = vmatprep.mubr.bf16.mxu1 %v65_v52  ;;  %v3158_v1 = vld [vmem:[#allocation2 + $0x1c0] ss:$16 sps:$4 sm:$0xff]   ;;  %v3159_v2 = vld [vmem:[#allocation2 + $0x1e4] ss:$16 sps:$4 sm:$0xff]   ;;  %v3163_v3 = vld [vmem:[#allocation2 + $0x1cc] ss:$16 sps:$4 sm:$0xff]  }
  0x29   :  { %1262 = vmatpush1.bf16.msra.mxu0 %v3104_v26  ;;  %v3161_v4 = vld [vmem:[#allocation2 + $0x1c8] ss:$16 sps:$4 sm:$0xff]   ;;  %v3164_v5 = vld [vmem:[#allocation2 + $0x1e0] ss:$16 sps:$4 sm:$0xff]   ;;  %v3167_v6 = vld [vmem:[#allocation2 + $0x204] ss:$16 sps:$4 sm:$0xff]  }
  0x2a   :  { %1424 = vmatpush1.bf16.msra.mxu1 %v3101_v25  ;;  %1263 = vmatprep.subr.bf16.mxu0 %v3105_v27  ;;  %v57_v8 = vld [vmem:[%s4029_s0] sm:$0xff]  ;;  %v3170_v9 = vld [vmem:[#allocation2 + $0x1ec] ss:$16 sps:$4 sm:$0xff]   ;;  %v3168_v12 = vld [vmem:[#allocation2 + $0x1e8] ss:$16 sps:$4 sm:$0xff]  }
  0x2b   :  { %1425 = vmatprep.subr.bf16.mxu1 %v3109_v28  ;;  %v3165_v10 = vld [vmem:[#allocation2 + $0x200] ss:$16 sps:$4 sm:$0xff]   ;;  %v64_v11 = vpack.c.bf16 %v57_v8, %v57_v8  ;;  %v3173_v13 = vld [vmem:[#allocation2 + $0x224] ss:$16 sps:$4 sm:$0xff]   ;;  %v3176_v14 = vld [vmem:[#allocation2 + $0x20c] ss:$16 sps:$4 sm:$0xff]  }
  0x2c   :  { %v3171_v15 = vld [vmem:[#allocation2 + $0x220] ss:$16 sps:$4 sm:$0xff]   ;;  %v3174_v16 = vld [vmem:[#allocation2 + $0x208] ss:$16 sps:$4 sm:$0xff]   ;;  %v3179_v17 = vld [vmem:[#allocation2 + $0x244] ss:$16 sps:$4 sm:$0xff]  }
  0x2d   :  { %1264 = vmatpush1.bf16.msra.mxu0 %v3110_v30  ;;  %v3182_v18 = vld [vmem:[#allocation2 + $0x22c] ss:$16 sps:$4 sm:$0xff]   ;;  %v3177_v19 = vld [vmem:[#allocation2 + $0x240] ss:$16 sps:$4 sm:$0xff]   ;;  %v3180_v20 = vld [vmem:[#allocation2 + $0x228] ss:$16 sps:$4 sm:$0xff]  }
  0x2e   :  { %1426 = vmatpush1.bf16.msra.mxu1 %v3107_v29  ;;  %1265 = vmatprep.subr.bf16.mxu0 %v3111_v31  ;;  %v3185_v21 = vld [vmem:[#allocation2 + $0x264] ss:$16 sps:$4 sm:$0xff]   ;;  %v3188_v22 = vld [vmem:[#allocation2 + $0x24c] ss:$16 sps:$4 sm:$0xff]   ;;  %v3183_v23 = vld [vmem:[#allocation2 + $0x260] ss:$16 sps:$4 sm:$0xff]  }
  0x2f   :  { %1427 = vmatprep.subr.bf16.mxu1 %v3115_v32  ;;  %v3186_v24 = vld [vmem:[#allocation2 + $0x248] ss:$16 sps:$4 sm:$0xff]   ;;  %v3191_v25 = vld [vmem:[#allocation2 + $0x284] ss:$16 sps:$4 sm:$0xff]   ;;  %v3194_v26 = vld [vmem:[#allocation2 + $0x26c] ss:$16 sps:$4 sm:$0xff]  }
  0x30   :  { %v3189_v27 = vld [vmem:[#allocation2 + $0x280] ss:$16 sps:$4 sm:$0xff]   ;;  %v3192_v28 = vld [vmem:[#allocation2 + $0x268] ss:$16 sps:$4 sm:$0xff]   ;;  %v3197_v29 = vld [vmem:[#allocation2 + $0x2a4] ss:$16 sps:$4 sm:$0xff]  }
  0x31   :  { %1266 = vmatpush1.bf16.msra.mxu0 %v3116_v34  ;;  %v3200_v30 = vld [vmem:[#allocation2 + $0x28c] ss:$16 sps:$4 sm:$0xff]   ;;  %v3195_v31 = vld [vmem:[#allocation2 + $0x2a0] ss:$16 sps:$4 sm:$0xff]   ;;  %v3198_v32 = vld [vmem:[#allocation2 + $0x288] ss:$16 sps:$4 sm:$0xff]  }
  0x32   :  { %1428 = vmatpush1.bf16.msra.mxu1 %v3113_v33  ;;  %1267 = vmatprep.subr.bf16.mxu0 %v3117_v35  ;;  %v3203_v33 = vld [vmem:[#allocation2 + $0x2c4] ss:$16 sps:$4 sm:$0xff]   ;;  %v3206_v34 = vld [vmem:[#allocation2 + $0x2ac] ss:$16 sps:$4 sm:$0xff]   ;;  %v3219_v49 = vld [vmem:[#allocation2 + $0x320] ss:$16 sps:$4 sm:$0xff]  }
  0x33   :  { %1429 = vmatprep.subr.bf16.mxu1 %v3121_v36  ;;  %v60_v35 = vld [vmem:[%s4029_s0 + $0x18] sm:$0xff]  ;;  %v3201_v36 = vld [vmem:[#allocation2 + $0x2c0] ss:$16 sps:$4 sm:$0xff]  }
  0x34   :  { %v3230_v52 = vld [vmem:[#allocation2 + $0x32c] ss:$16 sps:$4 sm:$0xff]   ;;  %v3252_v8 = vld [vmem:[#allocation2 + $0x3a8] ss:$16 sps:$4 sm:$0xff]  }
  0x35   :  { %1268 = vmatpush1.bf16.msra.mxu0 %v3122_v38  ;;  %v3204_v38 = vld [vmem:[#allocation2 + $0x2a8] ss:$16 sps:$4 sm:$0xff]  }
  0x36   :  { %1430 = vmatpush1.bf16.msra.mxu1 %v3119_v37  ;;  %1269 = vmatprep.subr.bf16.mxu0 %v3123_v39  ;;  %v67_v37 = vpack.c.bf16 %v60_v35, %v60_v35  ;;  %v3209_v39 = vld [vmem:[#allocation2 + $0x2e4] ss:$16 sps:$4 sm:$0xff]   ;;  %v3285_v35 = vld [vmem:[#allocation2 + $0x480] ss:$16 sps:$4 sm:$0xff]  }
  0x37   :  { %1431 = vmatprep.subr.bf16.mxu1 %v3127_v40  ;;  %v3212_v40 = vld [vmem:[#allocation2 + $0x2cc] ss:$16 sps:$4 sm:$0xff]  }
  0x39   :  { %1270 = vmatpush1.bf16.msra.mxu0 %v3128_v42  ;;  %v3210_v42 = vld [vmem:[#allocation2 + $0x2c8] ss:$16 sps:$4 sm:$0xff]  }
  0x3a   :  { %1432 = vmatpush1.bf16.msra.mxu1 %v3125_v41  ;;  %1271 = vmatprep.subr.bf16.mxu0 %v3129_v43  ;;  %v3207_v41 = vld [vmem:[#allocation2 + $0x2e0] ss:$16 sps:$4 sm:$0xff]   ;;  %v3215_v43 = vld [vmem:[#allocation2 + $0x304] ss:$16 sps:$4 sm:$0xff]  }
  0x3b   :  { %1433 = vmatprep.subr.bf16.mxu1 %v3133_v44  ;;  %v3218_v44 = vld [vmem:[#allocation2 + $0x2ec] ss:$16 sps:$4 sm:$0xff]  }
  0x3d   :  { %1272 = vmatpush1.bf16.msra.mxu0 %v3134_v46  ;;  %v3216_v46 = vld [vmem:[#allocation2 + $0x2e8] ss:$16 sps:$4 sm:$0xff]  }
  0x3e   :  { %1434 = vmatpush1.bf16.msra.mxu1 %v3131_v45  ;;  %1273 = vmatprep.subr.bf16.mxu0 %v3135_v47  ;;  %v3213_v45 = vld [vmem:[#allocation2 + $0x300] ss:$16 sps:$4 sm:$0xff]   ;;  %v3221_v47 = vld [vmem:[#allocation2 + $0x324] ss:$16 sps:$4 sm:$0xff]  }
  0x3f   :  { %1435 = vmatprep.subr.bf16.mxu1 %v3139_v48  ;;  %v3224_v48 = vld [vmem:[#allocation2 + $0x30c] ss:$16 sps:$4 sm:$0xff]  }
  0x41   :  { %1274 = vmatpush1.bf16.msra.mxu0 %v3140_v51  ;;  %v3227_v51 = vld [vmem:[#allocation2 + $0x344] ss:$16 sps:$4 sm:$0xff]  }
  0x42   :  { %1436 = vmatpush1.bf16.msra.mxu1 %v3137_v50  ;;  %1275 = vmatprep.subr.bf16.mxu0 %v3141_v53  ;;  %v3222_v50 = vld [vmem:[#allocation2 + $0x308] ss:$16 sps:$4 sm:$0xff]   ;;  %v3225_v53 = vld [vmem:[#allocation2 + $0x340] ss:$16 sps:$4 sm:$0xff]  }
  0x43   :  { %1437 = vmatprep.subr.bf16.mxu1 %v3145_v54  ;;  %v3228_v54 = vld [vmem:[#allocation2 + $0x328] ss:$16 sps:$4 sm:$0xff]  }
  0x45   :  { %1276 = vmatpush1.bf16.msra.mxu0 %v3146_v56  ;;  %v3236_v56 = vld [vmem:[#allocation2 + $0x34c] ss:$16 sps:$4 sm:$0xff]  }
  0x46   :  { %1438 = vmatpush1.bf16.msra.mxu1 %v3143_v55  ;;  %1277 = vmatprep.subr.bf16.mxu0 %v3147_v57  ;;  %v3233_v55 = vld [vmem:[#allocation2 + $0x364] ss:$16 sps:$4 sm:$0xff]   ;;  %v3231_v57 = vld [vmem:[#allocation2 + $0x360] ss:$16 sps:$4 sm:$0xff]  }
  0x47   :  { %1439 = vmatprep.subr.bf16.mxu1 %v3151_v58  ;;  %v3234_v58 = vld [vmem:[#allocation2 + $0x348] ss:$16 sps:$4 sm:$0xff]  }
  0x49   :  { %1278 = vmatpush1.bf16.msra.mxu0 %v3152_v60  ;;  %v3242_v60 = vld [vmem:[#allocation2 + $0x36c] ss:$16 sps:$4 sm:$0xff]  }
  0x4a   :  { %1440 = vmatpush1.bf16.msra.mxu1 %v3149_v59  ;;  %1279 = vmatprep.subr.bf16.mxu0 %v3153_v61  ;;  %v3239_v59 = vld [vmem:[#allocation2 + $0x384] ss:$16 sps:$4 sm:$0xff]   ;;  %v3237_v61 = vld [vmem:[#allocation2 + $0x380] ss:$16 sps:$4 sm:$0xff]  }
  0x4b   :  { %1441 = vmatprep.subr.bf16.mxu1 %v3157_v62  ;;  %v3240_v62 = vld [vmem:[#allocation2 + $0x368] ss:$16 sps:$4 sm:$0xff]  }
  0x4d   :  { %1280 = vmatpush1.bf16.msra.mxu0 %v3158_v1  ;;  %v3248_v1 = vld [vmem:[#allocation2 + $0x38c] ss:$16 sps:$4 sm:$0xff]  }
  0x4e   :  { %1442 = vmatpush1.bf16.msra.mxu1 %v3155_v63  ;;  %1281 = vmatprep.subr.bf16.mxu0 %v3159_v2  ;;  %v3245_v63 = vld [vmem:[#allocation2 + $0x3a4] ss:$16 sps:$4 sm:$0xff]   ;;  %v3243_v2 = vld [vmem:[#allocation2 + $0x3a0] ss:$16 sps:$4 sm:$0xff]  }
  0x4f   :  { %1443 = vmatprep.subr.bf16.mxu1 %v3163_v3  ;;  %v3246_v3 = vld [vmem:[#allocation2 + $0x388] ss:$16 sps:$4 sm:$0xff]  }
  0x51   :  { %1282 = vmatpush1.bf16.msra.mxu0 %v3164_v5  ;;  %v3254_v5 = vld [vmem:[#allocation2 + $0x3ac] ss:$16 sps:$4 sm:$0xff]  }
  0x52   :  { %1444 = vmatpush1.bf16.msra.mxu1 %v3161_v4  ;;  %1292 = vmatprep.subr.bf16.mxu0 %v3167_v6  ;;  %v3251_v4 = vld [vmem:[#allocation2 + $0x3c4] ss:$16 sps:$4 sm:$0xff]   ;;  %v3249_v6 = vld [vmem:[#allocation2 + $0x3c0] ss:$16 sps:$4 sm:$0xff]  }
  0x53   :  { %1445 = vmatprep.subr.bf16.mxu1 %v3170_v9  ;;  %v3257_v9 = vld [vmem:[#allocation2 + $0x3e4] ss:$16 sps:$4 sm:$0xff]  }
  0x54   :  { %1284 = vmatmul.mubr.bf16.vlgmr.msra.gmra.mrb[0].mxu0 %v64_v11 }
  0x55   :  { %1293 = vmatpush1.bf16.msra.mxu0 %v3165_v10  ;;  %1324 = vmatprep.mubr.bf16.mxu0 %v67_v37  ;;  %v3260_v10 = vld [vmem:[#allocation2 + $0x3cc] ss:$16 sps:$4 sm:$0xff]  }
  0x56   :  { %1446 = vmatpush1.bf16.msra.mxu1 %v3168_v12  ;;  %1294 = vmatprep.subr.bf16.mxu0 %v3173_v13  ;;  %v3258_v12 = vld [vmem:[#allocation2 + $0x3c8] ss:$16 sps:$4 sm:$0xff]   ;;  %v59_v13 = vld [vmem:[%s4029_s0 + $0x10] sm:$0xff] }
  0x57   :  { %1456 = vmatprep.subr.bf16.mxu1 %v3176_v14  ;;  %v3263_v14 = vld [vmem:[#allocation2 + $0x404] ss:$16 sps:$4 sm:$0xff]  }
  0x59   :  { %1448 = vmatmul.mubr.bf16.vlgmr.msra.gmra.mrb[4].mxu1 %v64_v11  ;;  %1295 = vmatpush1.bf16.msra.mxu0 %v3171_v15  ;;  %v3255_v11 = vld [vmem:[#allocation2 + $0x3e0] ss:$16 sps:$4 sm:$0xff]   ;;  %v3266_v15 = vld [vmem:[#allocation2 + $0x3ec] ss:$16 sps:$4 sm:$0xff]  }
  0x5a   :  { %1457 = vmatpush1.bf16.msra.mxu1 %v3174_v16  ;;  %1296 = vmatprep.subr.bf16.mxu0 %v3179_v17  ;;  %v3261_v16 = vld [vmem:[#allocation2 + $0x400] ss:$16 sps:$4 sm:$0xff]   ;;  %v66_v17 = vpack.c.bf16 %v59_v13, %v59_v13 }
  0x5b   :  { %1458 = vmatprep.subr.bf16.mxu1 %v3182_v18  ;;  %1488 = vmatprep.mubr.bf16.mxu1 %v67_v37  ;;  %v3264_v18 = vld [vmem:[#allocation2 + $0x3e8] ss:$16 sps:$4 sm:$0xff]   ;;  %v3293_v37 = vld [vmem:[#allocation2 + $0x4a4] ss:$16 sps:$4 sm:$0xff]   ;;  %v3345_v13 = vld [vmem:[#allocation2 + $0x5c0] ss:$16 sps:$4 sm:$0xff]  }
  0x5d   :  { %1297 = vmatpush1.bf16.msra.mxu0 %v3177_v19  ;;  %v3269_v19 = vld [vmem:[#allocation2 + $0x424] ss:$16 sps:$4 sm:$0xff]  }
  0x5e   :  { %1459 = vmatpush1.bf16.msra.mxu1 %v3180_v20  ;;  %1298 = vmatprep.subr.bf16.mxu0 %v3185_v21  ;;  %v3272_v20 = vld [vmem:[#allocation2 + $0x40c] ss:$16 sps:$4 sm:$0xff]  }
  0x5f   :  { %1460 = vmatprep.subr.bf16.mxu1 %v3188_v22  ;;  %v62_v21 = vld [vmem:[%s4029_s0 + $0x28] sm:$0xff] }
  0x60   :  { %v69_v22 = vpack.c.bf16 %v62_v21, %v62_v21 }
  0x61   :  { %1299 = vmatpush1.bf16.msra.mxu0 %v3183_v23  ;;  %v3267_v23 = vld [vmem:[#allocation2 + $0x420] ss:$16 sps:$4 sm:$0xff]  }
  0x62   :  { %1461 = vmatpush1.bf16.msra.mxu1 %v3186_v24  ;;  %1300 = vmatprep.subr.bf16.mxu0 %v3191_v25  ;;  %v3270_v24 = vld [vmem:[#allocation2 + $0x408] ss:$16 sps:$4 sm:$0xff]   ;;  %v3275_v25 = vld [vmem:[#allocation2 + $0x444] ss:$16 sps:$4 sm:$0xff]  }
  0x63   :  { %1462 = vmatprep.subr.bf16.mxu1 %v3194_v26  ;;  %v3278_v26 = vld [vmem:[#allocation2 + $0x42c] ss:$16 sps:$4 sm:$0xff]  }
  0x65   :  { %1301 = vmatpush1.bf16.msra.mxu0 %v3189_v27  ;;  %v3273_v27 = vld [vmem:[#allocation2 + $0x440] ss:$16 sps:$4 sm:$0xff]  }
  0x66   :  { %1463 = vmatpush1.bf16.msra.mxu1 %v3192_v28  ;;  %1302 = vmatprep.subr.bf16.mxu0 %v3197_v29  ;;  %v3276_v28 = vld [vmem:[#allocation2 + $0x428] ss:$16 sps:$4 sm:$0xff]   ;;  %v3281_v29 = vld [vmem:[#allocation2 + $0x464] ss:$16 sps:$4 sm:$0xff]  }
  0x67   :  { %1464 = vmatprep.subr.bf16.mxu1 %v3200_v30  ;;  %v3284_v30 = vld [vmem:[#allocation2 + $0x44c] ss:$16 sps:$4 sm:$0xff]  }
  0x69   :  { %1303 = vmatpush1.bf16.msra.mxu0 %v3195_v31  ;;  %v3279_v31 = vld [vmem:[#allocation2 + $0x460] ss:$16 sps:$4 sm:$0xff]  }
  0x6a   :  { %1465 = vmatpush1.bf16.msra.mxu1 %v3198_v32  ;;  %1304 = vmatprep.subr.bf16.mxu0 %v3203_v33  ;;  %v3282_v32 = vld [vmem:[#allocation2 + $0x448] ss:$16 sps:$4 sm:$0xff]   ;;  %v3287_v33 = vld [vmem:[#allocation2 + $0x484] ss:$16 sps:$4 sm:$0xff]  }
  0x6b   :  { %1466 = vmatprep.subr.bf16.mxu1 %v3206_v34  ;;  %v3290_v34 = vld [vmem:[#allocation2 + $0x46c] ss:$16 sps:$4 sm:$0xff]  }
  0x6d   :  { %1305 = vmatpush1.bf16.msra.mxu0 %v3201_v36  ;;  %v3288_v36 = vld [vmem:[#allocation2 + $0x468] ss:$16 sps:$4 sm:$0xff]  }
  0x6e   :  { %1467 = vmatpush1.bf16.msra.mxu1 %v3204_v38  ;;  %1306 = vmatprep.subr.bf16.mxu0 %v3209_v39  ;;  %v3296_v38 = vld [vmem:[#allocation2 + $0x48c] ss:$16 sps:$4 sm:$0xff]   ;;  %v3291_v39 = vld [vmem:[#allocation2 + $0x4a0] ss:$16 sps:$4 sm:$0xff]  }
  0x6f   :  { %1468 = vmatprep.subr.bf16.mxu1 %v3212_v40  ;;  %v3294_v40 = vld [vmem:[#allocation2 + $0x488] ss:$16 sps:$4 sm:$0xff]  }
  0x71   :  { %1307 = vmatpush1.bf16.msra.mxu0 %v3207_v41  ;;  %v3299_v41 = vld [vmem:[#allocation2 + $0x4c4] ss:$16 sps:$4 sm:$0xff]  }
  0x72   :  { %1469 = vmatpush1.bf16.msra.mxu1 %v3210_v42  ;;  %1308 = vmatprep.subr.bf16.mxu0 %v3215_v43  ;;  %v3302_v42 = vld [vmem:[#allocation2 + $0x4ac] ss:$16 sps:$4 sm:$0xff]   ;;  %v3297_v43 = vld [vmem:[#allocation2 + $0x4c0] ss:$16 sps:$4 sm:$0xff]  }
  0x73   :  { %1470 = vmatprep.subr.bf16.mxu1 %v3218_v44  ;;  %v3300_v44 = vld [vmem:[#allocation2 + $0x4a8] ss:$16 sps:$4 sm:$0xff]  }
  0x75   :  { %1309 = vmatpush1.bf16.msra.mxu0 %v3213_v45  ;;  %v3305_v45 = vld [vmem:[#allocation2 + $0x4e4] ss:$16 sps:$4 sm:$0xff]  }
  0x76   :  { %1471 = vmatpush1.bf16.msra.mxu1 %v3216_v46  ;;  %1310 = vmatprep.subr.bf16.mxu0 %v3221_v47  ;;  %v3308_v46 = vld [vmem:[#allocation2 + $0x4cc] ss:$16 sps:$4 sm:$0xff]   ;;  %v3303_v47 = vld [vmem:[#allocation2 + $0x4e0] ss:$16 sps:$4 sm:$0xff]  }
  0x77   :  { %1472 = vmatprep.subr.bf16.mxu1 %v3224_v48  ;;  %v3306_v48 = vld [vmem:[#allocation2 + $0x4c8] ss:$16 sps:$4 sm:$0xff]  }
  0x79   :  { %1311 = vmatpush1.bf16.msra.mxu0 %v3219_v49  ;;  %v3311_v49 = vld [vmem:[#allocation2 + $0x504] ss:$16 sps:$4 sm:$0xff]  }
  0x7a   :  { %1473 = vmatpush1.bf16.msra.mxu1 %v3222_v50  ;;  %1312 = vmatprep.subr.bf16.mxu0 %v3227_v51  ;;  %v3314_v50 = vld [vmem:[#allocation2 + $0x4ec] ss:$16 sps:$4 sm:$0xff]   ;;  %v3309_v51 = vld [vmem:[#allocation2 + $0x500] ss:$16 sps:$4 sm:$0xff]  }
  0x7b   :  { %1474 = vmatprep.subr.bf16.mxu1 %v3230_v52  ;;  %v3312_v52 = vld [vmem:[#allocation2 + $0x4e8] ss:$16 sps:$4 sm:$0xff]  }
  0x7d   :  { %1313 = vmatpush1.bf16.msra.mxu0 %v3225_v53  ;;  %v3317_v53 = vld [vmem:[#allocation2 + $0x524] ss:$16 sps:$4 sm:$0xff]  }
  0x7e   :  { %1475 = vmatpush1.bf16.msra.mxu1 %v3228_v54  ;;  %1314 = vmatprep.subr.bf16.mxu0 %v3233_v55  ;;  %v3320_v54 = vld [vmem:[#allocation2 + $0x50c] ss:$16 sps:$4 sm:$0xff]   ;;  %v3315_v55 = vld [vmem:[#allocation2 + $0x520] ss:$16 sps:$4 sm:$0xff]  }
  0x7f   :  { %1476 = vmatprep.subr.bf16.mxu1 %v3236_v56  ;;  %v3318_v56 = vld [vmem:[#allocation2 + $0x508] ss:$16 sps:$4 sm:$0xff]  }
  0x81   :  { %1315 = vmatpush1.bf16.msra.mxu0 %v3231_v57  ;;  %v3323_v57 = vld [vmem:[#allocation2 + $0x544] ss:$16 sps:$4 sm:$0xff]  }
  0x82   :  { %1477 = vmatpush1.bf16.msra.mxu1 %v3234_v58  ;;  %1316 = vmatprep.subr.bf16.mxu0 %v3239_v59  ;;  %v3326_v58 = vld [vmem:[#allocation2 + $0x52c] ss:$16 sps:$4 sm:$0xff]   ;;  %v3321_v59 = vld [vmem:[#allocation2 + $0x540] ss:$16 sps:$4 sm:$0xff]  }
  0x83   :  { %1478 = vmatprep.subr.bf16.mxu1 %v3242_v60  ;;  %v3324_v60 = vld [vmem:[#allocation2 + $0x528] ss:$16 sps:$4 sm:$0xff]  }
  0x85   :  { %1317 = vmatpush1.bf16.msra.mxu0 %v3237_v61  ;;  %v3329_v61 = vld [vmem:[#allocation2 + $0x564] ss:$16 sps:$4 sm:$0xff]  }
  0x86   :  { %1479 = vmatpush1.bf16.msra.mxu1 %v3240_v62  ;;  %1318 = vmatprep.subr.bf16.mxu0 %v3245_v63  ;;  %v3332_v62 = vld [vmem:[#allocation2 + $0x54c] ss:$16 sps:$4 sm:$0xff]   ;;  %v3327_v63 = vld [vmem:[#allocation2 + $0x560] ss:$16 sps:$4 sm:$0xff]  }
  0x87   :  { %1480 = vmatprep.subr.bf16.mxu1 %v3248_v1  ;;  %v3330_v1 = vld [vmem:[#allocation2 + $0x548] ss:$16 sps:$4 sm:$0xff]  }
  0x89   :  { %1319 = vmatpush1.bf16.msra.mxu0 %v3243_v2  ;;  %v3335_v2 = vld [vmem:[#allocation2 + $0x584] ss:$16 sps:$4 sm:$0xff]  }
  0x8a   :  { %1481 = vmatpush1.bf16.msra.mxu1 %v3246_v3  ;;  %1320 = vmatprep.subr.bf16.mxu0 %v3251_v4  ;;  %v3338_v3 = vld [vmem:[#allocation2 + $0x56c] ss:$16 sps:$4 sm:$0xff]   ;;  %v3333_v4 = vld [vmem:[#allocation2 + $0x580] ss:$16 sps:$4 sm:$0xff]  }
  0x8b   :  { %1482 = vmatprep.subr.bf16.mxu1 %v3254_v5  ;;  %v3336_v5 = vld [vmem:[#allocation2 + $0x568] ss:$16 sps:$4 sm:$0xff]  }
  0x8d   :  { %1321 = vmatpush1.bf16.msra.mxu0 %v3249_v6  ;;  %v3341_v6 = vld [vmem:[#allocation2 + $0x5a4] ss:$16 sps:$4 sm:$0xff]  }
  0x8e   :  { %1483 = vmatpush1.bf16.msra.mxu1 %v3252_v8  ;;  %1322 = vmatprep.subr.bf16.mxu0 %v3257_v9  ;;  %v3344_v8 = vld [vmem:[#allocation2 + $0x58c] ss:$16 sps:$4 sm:$0xff]   ;;  %v3339_v9 = vld [vmem:[#allocation2 + $0x5a0] ss:$16 sps:$4 sm:$0xff]  }
  0x8f   :  { %1484 = vmatprep.subr.bf16.mxu1 %v3260_v10  ;;  %v3342_v10 = vld [vmem:[#allocation2 + $0x588] ss:$16 sps:$4 sm:$0xff]  }
  0x91   :  { %1323 = vmatpush1.bf16.msra.mxu0 %v3255_v11  ;;  %v3347_v11 = vld [vmem:[#allocation2 + $0x5c4] ss:$16 sps:$4 sm:$0xff]  }
  0x92   :  { %1485 = vmatpush1.bf16.msra.mxu1 %v3258_v12  ;;  %1333 = vmatprep.subr.bf16.mxu0 %v3263_v14  ;;  %v3350_v12 = vld [vmem:[#allocation2 + $0x5ac] ss:$16 sps:$4 sm:$0xff]   ;;  %v3348_v14 = vld [vmem:[#allocation2 + $0x5a8] ss:$16 sps:$4 sm:$0xff]  }
  0x93   :  { %1486 = vmatprep.subr.bf16.mxu1 %v3266_v15  ;;  %v3353_v15 = vld [vmem:[#allocation2 + $0x5e4] ss:$16 sps:$4 sm:$0xff]  }
  0x94   :  { %1325 = vmatmul.mubr.bf16.vlgmr.msra.gmra.mrb[0].mxu0 %v66_v17 }
  0x95   :  { %1334 = vmatpush1.bf16.msra.mxu0 %v3261_v16  ;;  %1365 = vmatprep.mubr.bf16.mxu0 %v69_v22  ;;  %v3356_v16 = vld [vmem:[#allocation2 + $0x5cc] ss:$16 sps:$4 sm:$0xff]  }
  0x96   :  { %1487 = vmatpush1.bf16.msra.mxu1 %v3264_v18  ;;  %1335 = vmatprep.subr.bf16.mxu0 %v3269_v19  ;;  %v3354_v18 = vld [vmem:[#allocation2 + $0x5c8] ss:$16 sps:$4 sm:$0xff]   ;;  %v61_v19 = vld [vmem:[%s4029_s0 + $0x20] sm:$0xff] }
  0x97   :  { %1497 = vmatprep.subr.bf16.mxu1 %v3272_v20  ;;  %v3359_v20 = vld [vmem:[#allocation2 + $0x5ec] ss:$16 sps:$4 sm:$0xff]   ;;  %v68_v21 = vpack.c.bf16 %v61_v19, %v61_v19 }
  0x99   :  { %1489 = vmatmul.mubr.bf16.vlgmr.msra.gmra.mrb[4].mxu1 %v66_v17  ;;  %1336 = vmatpush1.bf16.msra.mxu0 %v3267_v23  ;;  %v3351_v17 = vld [vmem:[#allocation2 + $0x5e0] ss:$16 sps:$4 sm:$0xff]   ;;  %v3362_v23 = vld [vmem:[#allocation2 + $0x60c] ss:$16 sps:$4 sm:$0xff]  }
  0x9a   :  { %1498 = vmatpush1.bf16.msra.mxu1 %v3270_v24  ;;  %1337 = vmatprep.subr.bf16.mxu0 %v3275_v25  ;;  %v3360_v24 = vld [vmem:[#allocation2 + $0x608] ss:$16 sps:$4 sm:$0xff]  }
  0x9b   :  { %1499 = vmatprep.subr.bf16.mxu1 %v3278_v26  ;;  %1529 = vmatprep.mubr.bf16.mxu1 %v69_v22  ;;  %v3357_v22 = vld [vmem:[#allocation2 + $0x5e8] ss:$16 sps:$4 sm:$0xff]  }
  0x9d   :  { %1338 = vmatpush1.bf16.msra.mxu0 %v3273_v27 }
  0x9e   :  { %1500 = vmatpush1.bf16.msra.mxu1 %v3276_v28  ;;  %1339 = vmatprep.subr.bf16.mxu0 %v3281_v29  ;;  %v3365_v29 = vld [vmem:[%s4031_s2 + $0x4] ss:$8 sps:$4 sm:$0xff]  }
  0x9f   :  { %1501 = vmatprep.subr.bf16.mxu1 %v3284_v30  ;;  %v3363_v30 = vld [vmem:[%s4031_s2] ss:$8 sps:$4 sm:$0xff]  }
  0xa1   :  { %1340 = vmatpush1.bf16.msra.mxu0 %v3279_v31  ;;  %v3371_v31 = vld [vmem:[%s4031_s2 + $0x24] ss:$8 sps:$4 sm:$0xff]  }
  0xa2   :  { %1502 = vmatpush1.bf16.msra.mxu1 %v3282_v32  ;;  %1341 = vmatprep.subr.bf16.mxu0 %v3287_v33  ;;  %v3369_v32 = vld [vmem:[%s4031_s2 + $0x20] ss:$8 sps:$4 sm:$0xff]   ;;  %v3374_v33 = vld [vmem:[%s4031_s2 + $0x34] ss:$8 sps:$4 sm:$0xff]  }
  0xa3   :  { %1503 = vmatprep.subr.bf16.mxu1 %v3290_v34  ;;  %v3372_v34 = vld [vmem:[%s4031_s2 + $0x30] ss:$8 sps:$4 sm:$0xff]  }
  0xa5   :  { %1342 = vmatpush1.bf16.msra.mxu0 %v3285_v35  ;;  %v3377_v35 = vld [vmem:[%s4031_s2 + $0x44] ss:$8 sps:$4 sm:$0xff]  }
  0xa6   :  { %1504 = vmatpush1.bf16.msra.mxu1 %v3288_v36  ;;  %1343 = vmatprep.subr.bf16.mxu0 %v3293_v37  ;;  %v3375_v36 = vld [vmem:[%s4031_s2 + $0x40] ss:$8 sps:$4 sm:$0xff]   ;;  %v3380_v37 = vld [vmem:[%s4031_s2 + $0x54] ss:$8 sps:$4 sm:$0xff]  }
  0xa7   :  { %1505 = vmatprep.subr.bf16.mxu1 %v3296_v38  ;;  %v3378_v38 = vld [vmem:[%s4031_s2 + $0x50] ss:$8 sps:$4 sm:$0xff]  }
  0xa9   :  { %1344 = vmatpush1.bf16.msra.mxu0 %v3291_v39  ;;  %v3383_v39 = vld [vmem:[%s4031_s2 + $0x64] ss:$8 sps:$4 sm:$0xff]  }
  0xaa   :  { %1506 = vmatpush1.bf16.msra.mxu1 %v3294_v40  ;;  %1345 = vmatprep.subr.bf16.mxu0 %v3299_v41  ;;  %v3381_v40 = vld [vmem:[%s4031_s2 + $0x60] ss:$8 sps:$4 sm:$0xff]   ;;  %v3386_v41 = vld [vmem:[%s4031_s2 + $0x74] ss:$8 sps:$4 sm:$0xff]  }
  0xab   :  { %1507 = vmatprep.subr.bf16.mxu1 %v3302_v42  ;;  %v3384_v42 = vld [vmem:[%s4031_s2 + $0x70] ss:$8 sps:$4 sm:$0xff]  }
  0xad   :  { %1346 = vmatpush1.bf16.msra.mxu0 %v3297_v43  ;;  %v3389_v43 = vld [vmem:[%s4031_s2 + $0x84] ss:$8 sps:$4 sm:$0xff]  }
  0xae   :  { %1508 = vmatpush1.bf16.msra.mxu1 %v3300_v44  ;;  %1347 = vmatprep.subr.bf16.mxu0 %v3305_v45  ;;  %v3387_v44 = vld [vmem:[%s4031_s2 + $0x80] ss:$8 sps:$4 sm:$0xff]   ;;  %v3392_v45 = vld [vmem:[%s4031_s2 + $0x94] ss:$8 sps:$4 sm:$0xff]  }
  0xaf   :  { %1509 = vmatprep.subr.bf16.mxu1 %v3308_v46  ;;  %v3390_v46 = vld [vmem:[%s4031_s2 + $0x90] ss:$8 sps:$4 sm:$0xff]  }
  0xb1   :  { %1348 = vmatpush1.bf16.msra.mxu0 %v3303_v47  ;;  %v3395_v47 = vld [vmem:[%s4031_s2 + $0xa4] ss:$8 sps:$4 sm:$0xff]  }
  0xb2   :  { %1510 = vmatpush1.bf16.msra.mxu1 %v3306_v48  ;;  %1349 = vmatprep.subr.bf16.mxu0 %v3311_v49  ;;  %v3393_v48 = vld [vmem:[%s4031_s2 + $0xa0] ss:$8 sps:$4 sm:$0xff]   ;;  %v3398_v49 = vld [vmem:[%s4031_s2 + $0xb4] ss:$8 sps:$4 sm:$0xff]  }
  0xb3   :  { %1511 = vmatprep.subr.bf16.mxu1 %v3314_v50  ;;  %v3396_v50 = vld [vmem:[%s4031_s2 + $0xb0] ss:$8 sps:$4 sm:$0xff]  }
  0xb5   :  { %1350 = vmatpush1.bf16.msra.mxu0 %v3309_v51  ;;  %v3401_v51 = vld [vmem:[%s4031_s2 + $0xc4] ss:$8 sps:$4 sm:$0xff]  }
  0xb6   :  { %1512 = vmatpush1.bf16.msra.mxu1 %v3312_v52  ;;  %1351 = vmatprep.subr.bf16.mxu0 %v3317_v53  ;;  %v3399_v52 = vld [vmem:[%s4031_s2 + $0xc0] ss:$8 sps:$4 sm:$0xff]   ;;  %v3404_v53 = vld [vmem:[%s4031_s2 + $0xd4] ss:$8 sps:$4 sm:$0xff]  }
  0xb7   :  { %1513 = vmatprep.subr.bf16.mxu1 %v3320_v54  ;;  %v3402_v54 = vld [vmem:[%s4031_s2 + $0xd0] ss:$8 sps:$4 sm:$0xff]  }
  0xb9   :  { %1352 = vmatpush1.bf16.msra.mxu0 %v3315_v55  ;;  %v3407_v55 = vld [vmem:[%s4031_s2 + $0xe4] ss:$8 sps:$4 sm:$0xff]  }
  0xba   :  { %1514 = vmatpush1.bf16.msra.mxu1 %v3318_v56  ;;  %1353 = vmatprep.subr.bf16.mxu0 %v3323_v57  ;;  %v3405_v56 = vld [vmem:[%s4031_s2 + $0xe0] ss:$8 sps:$4 sm:$0xff]   ;;  %v3410_v57 = vld [vmem:[%s4031_s2 + $0xf4] ss:$8 sps:$4 sm:$0xff]  }
  0xbb   :  { %1515 = vmatprep.subr.bf16.mxu1 %v3326_v58  ;;  %v3408_v58 = vld [vmem:[%s4031_s2 + $0xf0] ss:$8 sps:$4 sm:$0xff]  }
  0xbd   :  { %1354 = vmatpush1.bf16.msra.mxu0 %v3321_v59  ;;  %v3413_v59 = vld [vmem:[%s4031_s2 + $0x104] ss:$8 sps:$4 sm:$0xff]  }
  0xbe   :  { %1516 = vmatpush1.bf16.msra.mxu1 %v3324_v60  ;;  %1355 = vmatprep.subr.bf16.mxu0 %v3329_v61 }
  0xbf   :  { %1517 = vmatprep.subr.bf16.mxu1 %v3332_v62 }
  0xc1   :  { %1356 = vmatpush1.bf16.msra.mxu0 %v3327_v63 }
  0xc2   :  { %1518 = vmatpush1.bf16.msra.mxu1 %v3330_v1  ;;  %1357 = vmatprep.subr.bf16.mxu0 %v3335_v2 }
  0xc3   :  { %1519 = vmatprep.subr.bf16.mxu1 %v3338_v3 }
  0xc5   :  { %1358 = vmatpush1.bf16.msra.mxu0 %v3333_v4 }
  0xc6   :  { %1520 = vmatpush1.bf16.msra.mxu1 %v3336_v5  ;;  %1359 = vmatprep.subr.bf16.mxu0 %v3341_v6 }
  0xc7   :  { %1521 = vmatprep.subr.bf16.mxu1 %v3344_v8 }
  0xc9   :  { %1360 = vmatpush1.bf16.msra.mxu0 %v3339_v9 }
  0xca   :  { %1522 = vmatpush1.bf16.msra.mxu1 %v3342_v10  ;;  %1361 = vmatprep.subr.bf16.mxu0 %v3347_v11 }
  0xcb   :  { %1523 = vmatprep.subr.bf16.mxu1 %v3350_v12 }
  0xcd   :  { %1362 = vmatpush1.bf16.msra.mxu0 %v3345_v13 }
  0xce   :  { %1524 = vmatpush1.bf16.msra.mxu1 %v3348_v14  ;;  %1363 = vmatprep.subr.bf16.mxu0 %v3353_v15 }
  0xcf   :  { %1525 = vmatprep.subr.bf16.mxu1 %v3356_v16 }
  0xd1   :  { %1364 = vmatpush1.bf16.msra.mxu0 %v3351_v17 }
  0xd2   :  { %1526 = vmatpush1.bf16.msra.mxu1 %v3354_v18  ;;  %2167 = vmatprep.subr.bf16.mxu0 %v3365_v29 }
  0xd3   :  { %1527 = vmatprep.subr.bf16.mxu1 %v3359_v20 }
  0xd4   :  { %1366 = vmatmul.mubr.bf16.vlgmr.msra.gmra.mrb[0].mxu0 %v68_v21 }
  0xd5   :  { %2168 = vmatpush1.bf16.msra.mxu0 %v3363_v30 }
  0xd6   :  { %1528 = vmatpush1.bf16.msra.mxu1 %v3357_v22 }
  0xd7   :  { %1538 = vmatprep.subr.bf16.mxu1 %v3362_v23 }
  0xd9   :  { %1530 = vmatmul.mubr.bf16.vlgmr.msra.gmra.mrb[4].mxu1 %v68_v21 }
  0xda   :  { %1539 = vmatpush1.bf16.msra.mxu1 %v3360_v24  ;;  %1570 = vmatprep.mubr.bf16.mxu1 %v3548_v0  ;;  %v3368_v0 = vld [vmem:[%s4031_s2 + $0x14] ss:$8 sps:$4 sm:$0xff]  }
  0xdb   :  { %2169 = vmatprep.subr.bf16.mxu0 %v3368_v0 }
  0xe5   :  { %2894 = vmatmul.mubr.msk.bf16.vlgmr.msra.gmra.mrb[4].mxu1 %vm1247_vm0, %v3634_v7  ;;  %v3366_v7 = vld [vmem:[%s4031_s2 + $0x10] ss:$8 sps:$4 sm:$0xff]  }
  0xe6   :  { %2170 = vmatpush1.bf16.msra.mxu0 %v3366_v7 }
  0xe7   :  { %2171 = vmatprep.subr.bf16.mxu0 %v3371_v31 }
  0xea   :  { %2172 = vmatpush1.bf16.msra.mxu0 %v3369_v32 }
  0xeb   :  { %2173 = vmatprep.subr.bf16.mxu0 %v3374_v33 }
  0xec   :  { %v3659_v25 = vpop.f32.mrb[0].mxu1 }
  0xed   :  { %v3661_v26 = vpop.f32.mrb[1].mxu1 }
  0xee   :  { %v1412_v27 = vpop.f32.mrb[2].mxu1  ;;  %2174 = vmatpush1.bf16.msra.mxu0 %v3372_v34 }
  0xef   :  { %v1413_v28 = vpop.f32.mrb[3].mxu1  ;;  %2175 = vmatprep.subr.bf16.mxu0 %v3377_v35 }
  0xf2   :  { %2176 = vmatpush1.bf16.msra.mxu0 %v3375_v36 }
  0xf3   :  { %2177 = vmatprep.subr.bf16.mxu0 %v3380_v37 }
  0xf6   :  { %2178 = vmatpush1.bf16.msra.mxu0 %v3378_v38 }
  0xf7   :  { %2179 = vmatprep.subr.bf16.mxu0 %v3383_v39 }
  0xfa   :  { %2180 = vmatpush1.bf16.msra.mxu0 %v3381_v40 }
  0xfb   :  { %2181 = vmatprep.subr.bf16.mxu0 %v3386_v41 }
  0xfe   :  { %2182 = vmatpush1.bf16.msra.mxu0 %v3384_v42 }
  0xff   :  { %2183 = vmatprep.subr.bf16.mxu0 %v3389_v43 }
 0x102   :  { %2184 = vmatpush1.bf16.msra.mxu0 %v3387_v44 }
 0x103   :  { %2185 = vmatprep.subr.bf16.mxu0 %v3392_v45 }
 0x106   :  { %2186 = vmatpush1.bf16.msra.mxu0 %v3390_v46 }
 0x107   :  { %2187 = vmatprep.subr.bf16.mxu0 %v3395_v47 }
 0x10a   :  { %2188 = vmatpush1.bf16.msra.mxu0 %v3393_v48 }
 0x10b   :  { %2189 = vmatprep.subr.bf16.mxu0 %v3398_v49 }
 0x10e   :  { %2190 = vmatpush1.bf16.msra.mxu0 %v3396_v50 }
 0x10f   :  { %2191 = vmatprep.subr.bf16.mxu0 %v3401_v51 }
 0x112   :  { %2192 = vmatpush1.bf16.msra.mxu0 %v3399_v52 }
 0x113   :  { %2193 = vmatprep.subr.bf16.mxu0 %v3404_v53 }
 0x116   :  { %2194 = vmatpush1.bf16.msra.mxu0 %v3402_v54 }
 0x117   :  { %2195 = vmatprep.subr.bf16.mxu0 %v3407_v55 }
 0x11a   :  { %2196 = vmatpush1.bf16.msra.mxu0 %v3405_v56 }
 0x11b   :  { %2197 = vmatprep.subr.bf16.mxu0 %v3410_v57 }
 0x11e   :  { %2198 = vmatpush1.bf16.msra.mxu0 %v3408_v58 }
 0x11f   :  { %2208 = vmatprep.subr.bf16.mxu0 %v3413_v59 }
 0x1a7   :  { %v1367_v60 = vpop.f32.mrb[0].mxu0 }
 0x1a8   :  { %v3763_v61 = vadd.f32 %v3659_v25, %v1367_v60  ;;  %v1369_v62 = vpop.f32.mrb[1].mxu0 }
 0x1a9   :  { %v3766_v63 = vadd.f32 %v3661_v26, %v1369_v62  ;;  %v1371_v1 = vpop.f32.mrb[2].mxu0 }
 0x1aa   :  { %v1579_v2 = vrot.slane %v3763_v61, 4  ;;  %v1607_v3 = vmul.f32 %v3763_v61, %v3763_v61  ;;  %v1372_v4 = vpop.f32.mrb[3].mxu0 }
 0x1ab   :  { %v1585_v5 = vrot.slane %v3766_v63, 4  ;;  %v1608_v6 = vmul.f32 %v3766_v63, %v3766_v63 }
 0x1ac   :  { %v1580_v8 = vadd.f32 %v3763_v61, %v1579_v2  ;;  %v1611_v9 = vrot.slane %v1607_v3, 4 }
 0x1ad   :  { %v1586_v10 = vadd.f32 %v3766_v63, %v1585_v5  ;;  %v1617_v11 = vrot.slane %v1608_v6, 4 }
 0x1ae   :  { %v1581_v12 = vrot.slane %v1580_v8, 2  ;;  %v1612_v13 = vadd.f32 %v1611_v9, %v1607_v3 }
 0x1af   :  { %v1587_v14 = vrot.slane %v1586_v10, 2  ;;  %v1618_v15 = vadd.f32 %v1617_v11, %v1608_v6 }
 0x1b0   :  { %v1582_v16 = vadd.f32 %v1581_v12, %v1580_v8  ;;  %v1613_v17 = vrot.slane %v1612_v13, 2 }
 0x1b1   :  { %v1588_v18 = vadd.f32 %v1587_v14, %v1586_v10  ;;  %v1619_v19 = vrot.slane %v1618_v15, 2 }
 0x1b2   :  { %v1583_v20 = vrot.slane %v1582_v16, 1  ;;  %v1614_v21 = vadd.f32 %v1613_v17, %v1612_v13 }
 0x1b3   :  { %v1589_v22 = vrot.slane %v1588_v18, 1  ;;  %v1620_v23 = vadd.f32 %v1619_v19, %v1618_v15 }
 0x1b4   :  { %v1584_v24 = vadd.f32 %v1583_v20, %v1582_v16  ;;  %v1615_v25 = vrot.slane %v1614_v21, 1 }
 0x1b5   :  { %v1590_v26 = vadd.f32 %v1589_v22, %v1588_v18  ;;  %v1621_v27 = vrot.slane %v1620_v23, 1 }
 0x1b6   :  { %v3776_v28 = vmul.f32 0.125, %v1584_v24  ;;  %v1616_v29 = vadd.f32 %v1615_v25, %v1614_v21  ;;  %v3549_v25 = vmov 1966171168  }
 0x1b7   :  { %v3778_v30 = vmul.f32 0.125, %v1590_v26  ;;  %v1622_v0 = vadd.f32 %v1621_v27, %v1620_v23  ;;  %v1667_v26 = vunpack.c.l.s4 %v3549_v25  ;;  %v1669_v27 = vlaneseq  ;;  %v3431_v25 = vld [vmem:[%s4031_s2 + $0x164] ss:$8 sps:$4 sm:$0xff]  }
 0x1b8   :  { %v3780_v7 = vpop.f32.mrb[4].mxu1  ;;  %v1635_v31 = vmul.f32 0.125, %v1616_v29  ;;  %v1639_v32 = vmul.f32 %v3776_v28, %v3776_v28 }
 0x1b9   :  { %v1591_v33 = vrot.slane %v3780_v7, 4  ;;  %v1609_v34 = vmul.f32 %v3780_v7, %v3780_v7  ;;  %v3787_v35 = vpop.f32.mrb[5].mxu1  ;;  %v1636_v36 = vmul.f32 0.125, %v1622_v0  ;;  %v1640_v37 = vmul.f32 %v3778_v30, %v3778_v30 }
 0x1ba   :  { %v1597_v38 = vrot.slane %v3787_v35, 4  ;;  %v1610_v39 = vmul.f32 %v3787_v35, %v3787_v35  ;;  %v1576_v40 = vpop.f32.mrb[6].mxu1  ;;  %v1643_v41 = vsub.f32 %v1635_v31, %v1639_v32  ;;  %v1668_v29 = vunpack.c.0.s8 %v1667_v26  ;;  %v3429_v26 = vld [vmem:[%s4031_s2 + $0x160] ss:$8 sps:$4 sm:$0xff]  }
 0x1bb   :  { %v1592_v42 = vadd.f32 %v1591_v33, %v3780_v7  ;;  %v1623_v43 = vrot.slane %v1609_v34, 4  ;;  %v1577_v44 = vpop.f32.mrb[7].mxu1  ;;  %v1644_v45 = vsub.f32 %v1636_v36, %v1640_v37  ;;  %v1670_v0 = vshrl.u32 %v1669_v27, 7  ;;  %v3434_v27 = vld [vmem:[%s4031_s2 + $0x174] ss:$8 sps:$4 sm:$0xff]  }
 0x1bc   :  { %v1598_v46 = vadd.f32 %v1597_v38, %v3787_v35  ;;  %v1629_v47 = vrot.slane %v1610_v39, 4  ;;  %v1647_v48 = vmax.f32 %v1643_v41, 0.0 }
 0x1bd   :  { %v1593_v49 = vrot.slane %v1592_v42, 2  ;;  %v1624_v50 = vadd.f32 %v1623_v43, %v1609_v34  ;;  %v1648_v51 = vmax.f32 %v1644_v45, 0.0  ;;  %v3796_v32 = vsub.s32 %v1668_v29, %v1670_v0  ;;  %v3432_v29 = vld [vmem:[%s4031_s2 + $0x170] ss:$8 sps:$4 sm:$0xff]  }
 0x1be   :  { %v1599_v52 = vrot.slane %v1598_v46, 2  ;;  %v1630_v53 = vadd.f32 %v1629_v47, %v1610_v39  ;;  %v1652_v54 = vadd.f32 1e-05, %v1647_v48  ;;  %v1651_v39 = vld [vmem:[%s4034_s5] sm:$0xf]  ;;  %v3803_v40 = vsub.s32 0, %v1670_v0 }
 0x1bf   :  { %v1594_v55 = vadd.f32 %v1593_v49, %v1592_v42  ;;  %v1625_v56 = vrot.slane %v1624_v50, 2  ;;  %v1653_v57 = vadd.f32 1e-05, %v1648_v51  ;;  %v1702_v42 = vsub.s32 2, %v1670_v0 }
 0x1c0   :  { %v1600_v58 = vadd.f32 %v1599_v52, %v1598_v46  ;;  %v1631_v59 = vrot.slane %v1630_v53, 2  ;;  %3483 = vrsqrt.f32 %v1652_v54  ;;  %v1706_v43 = vsub.s32 3, %v1670_v0 }
 0x1c1   :  { %v1595_v60 = vrot.slane %v1594_v55, 1  ;;  %v1626_v62 = vadd.f32 %v1625_v56, %v1624_v50  ;;  %3485 = vrsqrt.f32 %v1653_v57  ;;  %v3806_v44 = vsub.s32 1, %v1670_v0  ;;  %v3437_v0 = vld [vmem:[%s4031_s2 + $0x184] ss:$8 sps:$4 sm:$0xff]  }
 0x1c2   :  { %v1601_v1 = vrot.slane %v1600_v58, 1  ;;  %v1632_v2 = vadd.f32 %v1631_v59, %v1630_v53 }
 0x1c3   :  { %v1596_v3 = vadd.f32 %v1595_v60, %v1594_v55  ;;  %v1627_v4 = vrot.slane %v1626_v62, 1 }
 0x1c4   :  { %v1602_v5 = vadd.f32 %v1601_v1, %v1600_v58  ;;  %v1633_v6 = vrot.slane %v1632_v2, 1 }
 0x1c5   :  { %v1605_v8 = vmul.f32 0.125, %v1596_v3  ;;  %v1628_v9 = vadd.f32 %v1627_v4, %v1626_v62 }
 0x1c6   :  { %v1606_v10 = vmul.f32 0.125, %v1602_v5  ;;  %v1634_v11 = vadd.f32 %v1633_v6, %v1632_v2 }
 0x1c7   :  { %v1637_v12 = vmul.f32 0.125, %v1628_v9  ;;  %v1641_v13 = vmul.f32 %v1605_v8, %v1605_v8 }
 0x1c8   :  { %v1638_v14 = vmul.f32 0.125, %v1634_v11  ;;  %v1642_v15 = vmul.f32 %v1606_v10, %v1606_v10 }
 0x1c9   :  { %v1645_v16 = vsub.f32 %v1637_v12, %v1641_v13  ;;  %v3411_v12 = vld [vmem:[%s4031_s2 + $0x100] ss:$8 sps:$4 sm:$0xff]  }
 0x1ca   :  { %v1646_v17 = vsub.f32 %v1638_v14, %v1642_v15  ;;  %v3484_v18 = vpop.eup %3483  ;;  %v3416_v14 = vld [vmem:[%s4031_s2 + $0x114] ss:$8 sps:$4 sm:$0xff]  }
 0x1cb   :  { %v1649_v19 = vmax.f32 %v1645_v16, 0.0  ;;  %v3486_v20 = vpop.eup %3485  ;;  %v3414_v16 = vld [vmem:[%s4031_s2 + $0x110] ss:$8 sps:$4 sm:$0xff]  }
 0x1cc   :  { %v1650_v21 = vmax.f32 %v1646_v17, 0.0  ;;  %v1664_v23 = vcombine.low %v3484_v18, %v3486_v20  ;;  %v3419_v17 = vld [vmem:[%s4031_s2 + $0x124] ss:$8 sps:$4 sm:$0xff]   ;;  %v3417_v18 = vld [vmem:[%s4031_s2 + $0x120] ss:$8 sps:$4 sm:$0xff]  }
 0x1cd   :  { %v1654_v22 = vadd.f32 1e-05, %v1649_v19  ;;  %v3422_v19 = vld [vmem:[%s4031_s2 + $0x134] ss:$8 sps:$4 sm:$0xff]   ;;  %v3420_v20 = vld [vmem:[%s4031_s2 + $0x130] ss:$8 sps:$4 sm:$0xff]  }
 0x1ce   :  { %v1655_v24 = vadd.f32 1e-05, %v1650_v21  ;;  %v1672_v36 = vrot.slane %v1664_v23, %v3796_v32  ;;  %v3425_v21 = vld [vmem:[%s4031_s2 + $0x144] ss:$8 sps:$4 sm:$0xff]   ;;  %v3428_v23 = vld [vmem:[%s4031_s2 + $0x154] ss:$8 sps:$4 sm:$0xff]  }
 0x1cf   :  { %3487 = vrsqrt.f32 %v1654_v22  ;;  %v3423_v22 = vld [vmem:[%s4031_s2 + $0x140] ss:$8 sps:$4 sm:$0xff]  }
 0x1d0   :  { %3489 = vrsqrt.f32 %v1655_v24  ;;  %v3426_v24 = vld [vmem:[%s4031_s2 + $0x150] ss:$8 sps:$4 sm:$0xff]  }
 0x1d9   :  { %v3488_v31 = vpop.eup %3487 }
 0x1da   :  { %v3490_v33 = vpop.eup %3489 }
 0x1db   :  { %v1665_v34 = vcombine.low %v3488_v31, %v3490_v33  ;;  %v3435_v31 = vld [vmem:[%s4031_s2 + $0x180] ss:$8 sps:$4 sm:$0xff]   ;;  %v3440_v33 = vld [vmem:[%s4031_s2 + $0x194] ss:$8 sps:$4 sm:$0xff]  }
 0x1dd   :  { %v1679_v37 = vrot.slane %v1665_v34, %v3796_v32  ;;  %v3438_v34 = vld [vmem:[%s4031_s2 + $0x190] ss:$8 sps:$4 sm:$0xff]  }
 0x1df   :  { %v1680_v38 = vcombine.low %v1672_v36, %v1679_v37  ;;  %v3443_v36 = vld [vmem:[%s4031_s2 + $0x1a4] ss:$8 sps:$4 sm:$0xff]   ;;  %v3441_v37 = vld [vmem:[%s4031_s2 + $0x1a0] ss:$8 sps:$4 sm:$0xff]  }
 0x1e1   :  { %v1687_v41 = vrot.slane %v1680_v38, %v3796_v32  ;;  %v3446_v38 = vld [vmem:[%s4031_s2 + $0x1b4] ss:$8 sps:$4 sm:$0xff]  }
 0x1e3   :  { %v1689_v45 = vmul.f32 %v1687_v41, %v1651_v39  ;;  %v3444_v39 = vld [vmem:[%s4031_s2 + $0x1b0] ss:$8 sps:$4 sm:$0xff]   ;;  %v3449_v41 = vld [vmem:[%s4031_s2 + $0x1c4] ss:$8 sps:$4 sm:$0xff]  }
 0x1e5   :  { %v1703_v46 = vrot.slane %v1689_v45, %v1702_v42  ;;  %v1707_v47 = vrot.slane %v1689_v45, %v1706_v43  ;;  %v1695_v48 = vrot.slane %v1689_v45, %v3803_v40  ;;  %v1699_v49 = vrot.slane %v1689_v45, %v3806_v44  ;;  %v3450_v45 = vld [vmem:[%s4031_s2 + $0x1d0] ss:$8 sps:$4 sm:$0xff]  }
 0x1e7   :  { %v1714_v50 = vmul.f32 %v1703_v46, %v1605_v8  ;;  %v1715_v51 = vmul.f32 %v1707_v47, %v1606_v10  ;;  %v1749_v52 = vmul.f32 %v1707_v47, %v3787_v35  ;;  %v1712_v53 = vmul.f32 %v1695_v48, %v3776_v28  ;;  %v1690_v35 = vld [vmem:[%s4035_s6] sm:$0xf] }
 0x1e8   :  { %v1713_v54 = vmul.f32 %v1699_v49, %v3778_v30  ;;  %v1747_v55 = vmul.f32 %v3766_v63, %v1699_v49  ;;  %v1746_v56 = vmul.f32 %v3763_v61, %v1695_v48  ;;  %v1748_v57 = vmul.f32 %v1703_v46, %v3780_v7  ;;  %v3455_v46 = vld [vmem:[%s4031_s2 + $0x1e4] ss:$8 sps:$4 sm:$0xff]   ;;  %v3453_v47 = vld [vmem:[%s4031_s2 + $0x1e0] ss:$8 sps:$4 sm:$0xff]   ;;  %v3458_v48 = vld [vmem:[%s4031_s2 + $0x1f4] ss:$8 sps:$4 sm:$0xff]  }
 0x1e9   :  { %v1721_v58 = vcombine.low %v1714_v50, %v1715_v51  ;;  %v3456_v49 = vld [vmem:[%s4031_s2 + $0x1f0] ss:$8 sps:$4 sm:$0xff]  }
 0x1ea   :  { %v1720_v59 = vcombine.low %v1712_v53, %v1713_v54  ;;  %v3460_v53 = vld [vmem:[%s4032_s3] sm:$0xff]   ;;  %v3461_v54 = vld [vmem:[%s4032_s3 + $0x48] sm:$0xff]  }
 0x1eb   :  { %v1735_v60 = vrot.slane %v1721_v58, %v3796_v32  ;;  %v3465_v58 = vld [vmem:[%s4032_s3 + $0x58] sm:$0xff]  }
 0x1ec   :  { %v1728_v62 = vrot.slane %v1720_v59, %v3796_v32  ;;  %v3466_v59 = vld [vmem:[%s4032_s3 + $0x18] sm:$0xff]  }
 0x1ee   :  { %v1736_v1 = vcombine.low %v1728_v62, %v1735_v60  ;;  %v3467_v60 = vld [vmem:[%s4032_s3 + $0x60] sm:$0xff]  }
 0x1ef   :  { %v3468_v62 = vld [vmem:[%s4032_s3 + $0x20] sm:$0xff]  }
 0x1f0   :  { %v1743_v28 = vrot.slane %v1736_v1, %v3796_v32  ;;  %v3469_v1 = vld [vmem:[%s4032_s3 + $0x68] sm:$0xff]  }
 0x1f2   :  { %v1745_v30 = vsub.f32 %v1690_v35, %v1743_v28  ;;  %v3470_v35 = vld [vmem:[%s4032_s3 + $0x28] sm:$0xff]   ;;  %v3471_v28 = vld [vmem:[%s4032_s3 + $0x70] sm:$0xff]  }
 0x1f4   :  { %v1758_v63 = vrot.slane %v1745_v30, %v3806_v44  ;;  %v1754_v61 = vrot.slane %v1745_v30, %v3803_v40  ;;  %v1766_v2 = vrot.slane %v1745_v30, %v1706_v43  ;;  %v1762_v7 = vrot.slane %v1745_v30, %v1702_v42  ;;  %v3447_v42 = vld [vmem:[%s4031_s2 + $0x1c0] ss:$8 sps:$4 sm:$0xff]   ;;  %v3452_v43 = vld [vmem:[%s4031_s2 + $0x1d4] ss:$8 sps:$4 sm:$0xff]  }
 0x1f5   :  { %v3472_v30 = vld [vmem:[%s4032_s3 + $0x30] sm:$0xff]  }
 0x1f6   :  { %v1772_v3 = vadd.f32 %v1758_v63, %v1747_v55  ;;  %v1771_v4 = vadd.f32 %v1754_v61, %v1746_v56  ;;  %v1774_v5 = vadd.f32 %v1766_v2, %v1749_v52  ;;  %v3824_v6 = vadd.f32 %v1762_v7, %v1748_v57  ;;  %v3459_v52 = vld [vmem:[%s4032_s3 + $0x40] sm:$0xff]   ;;  %v3462_v55 = vld [vmem:[%s4032_s3 + $0x8] sm:$0xff]   ;;  %v3463_v56 = vld [vmem:[%s4032_s3 + $0x50] sm:$0xff]  }
 0x1f7   :  { %2984 = vmatprep.subr.bf16.mxu1 %v3459_v52  ;;  %v3464_v57 = vld [vmem:[%s4032_s3 + $0x10] sm:$0xff]   ;;  %v3473_v63 = vld [vmem:[%s4032_s3 + $0x78] sm:$0xff]  }
 0x1f8   :  { %v1776_v8 = vmax.f32 %v1772_v3, 0.0  ;;  %v1775_v9 = vmax.f32 %v1771_v4, 0.0  ;;  %v1778_v10 = vmax.f32 %v1774_v5, 0.0  ;;  %v1777_v50 = vmax.f32 %v3824_v6, 0.0  ;;  %2985 = vmatpush3.bf16.msra.mxu1 %v3460_v53  ;;  %v3474_v61 = vld [vmem:[%s4032_s3 + $0x38] sm:$0xff]  }
 0x1f9   :  { %2986 = vmatprep.subr.bf16.mxu1 %v3461_v54  ;;  %v2285_v53 = vld [vmem:[%s4036_s7] sm:$0x3] }
 0x1fa   :  { %v1780_v11 = vpack.c.bf16 %v1776_v8, %v1776_v8  ;;  %v1779_v13 = vpack.c.bf16 %v1775_v9, %v1775_v9  ;;  %v1782_v15 = vpack.c.bf16 %v1778_v10, %v1778_v10  ;;  %v1781_v51 = vpack.c.bf16 %v1777_v50, %v1777_v50 }
 0x1fc   :  { %2199 = vmatprep.mubr.bf16.mxu0 %v1780_v11  ;;  %2987 = vmatpush3.bf16.msra.mxu1 %v3462_v55 }
 0x1fd   :  { %2200 = vmatmul.mubr.bf16.vlgmr.msra.gmra.mrb[4].mxu0 %v1779_v13  ;;  %2988 = vmatprep.subr.bf16.mxu1 %v3463_v56 }
 0x1fe   :  { %2209 = vmatpush1.bf16.msra.mxu0 %v3411_v12  ;;  %2240 = vmatprep.mubr.bf16.mxu0 %v1782_v15 }
 0x1ff   :  { %2210 = vmatprep.subr.bf16.mxu0 %v3416_v14 }
 0x200   :  { %2989 = vmatpush3.bf16.msra.mxu1 %v3464_v57 }
 0x201   :  { %2990 = vmatprep.subr.bf16.mxu1 %v3465_v58 }
 0x202   :  { %2211 = vmatpush1.bf16.msra.mxu0 %v3414_v16 }
 0x203   :  { %2212 = vmatprep.subr.bf16.mxu0 %v3419_v17 }
 0x204   :  { %2991 = vmatpush3.bf16.msra.mxu1 %v3466_v59 }
 0x205   :  { %2992 = vmatprep.subr.bf16.mxu1 %v3467_v60 }
 0x206   :  { %2213 = vmatpush1.bf16.msra.mxu0 %v3417_v18 }
 0x207   :  { %2214 = vmatprep.subr.bf16.mxu0 %v3422_v19 }
 0x208   :  { %2993 = vmatpush3.bf16.msra.mxu1 %v3468_v62 }
 0x209   :  { %2994 = vmatprep.subr.bf16.mxu1 %v3469_v1 }
 0x20a   :  { %2215 = vmatpush1.bf16.msra.mxu0 %v3420_v20 }
 0x20b   :  { %2216 = vmatprep.subr.bf16.mxu0 %v3425_v21 }
 0x20c   :  { %2995 = vmatpush3.bf16.msra.mxu1 %v3470_v35 }
 0x20d   :  { %2996 = vmatprep.subr.bf16.mxu1 %v3471_v28  ;;  %v2309_v28 = vld [vmem:[%s4037_s8] sm:$0x3] }
 0x20e   :  { %2217 = vmatpush1.bf16.msra.mxu0 %v3423_v22 }
 0x20f   :  { %2218 = vmatprep.subr.bf16.mxu0 %v3428_v23 }
 0x210   :  { %2997 = vmatpush3.bf16.msra.mxu1 %v3472_v30 }
 0x211   :  { %2998 = vmatprep.subr.bf16.mxu1 %v3473_v63 }
 0x212   :  { %2219 = vmatpush1.bf16.msra.mxu0 %v3426_v24 }
 0x213   :  { %2220 = vmatprep.subr.bf16.mxu0 %v3431_v25 }
 0x214   :  { %2999 = vmatpush3.bf16.msra.mxu1 %v3474_v61 }
 0x216   :  { %2221 = vmatpush1.bf16.msra.mxu0 %v3429_v26 }
 0x217   :  { %2222 = vmatprep.subr.bf16.mxu0 %v3434_v27 }
 0x21a   :  { %2223 = vmatpush1.bf16.msra.mxu0 %v3432_v29 }
 0x21b   :  { %2224 = vmatprep.subr.bf16.mxu0 %v3437_v0 }
 0x21e   :  { %2225 = vmatpush1.bf16.msra.mxu0 %v3435_v31 }
 0x21f   :  { %2226 = vmatprep.subr.bf16.mxu0 %v3440_v33 }
 0x222   :  { %2227 = vmatpush1.bf16.msra.mxu0 %v3438_v34 }
 0x223   :  { %2228 = vmatprep.subr.bf16.mxu0 %v3443_v36 }
 0x226   :  { %2229 = vmatpush1.bf16.msra.mxu0 %v3441_v37 }
 0x227   :  { %2230 = vmatprep.subr.bf16.mxu0 %v3446_v38 }
 0x22a   :  { %2231 = vmatpush1.bf16.msra.mxu0 %v3444_v39 }
 0x22b   :  { %2232 = vmatprep.subr.bf16.mxu0 %v3449_v41 }
 0x22e   :  { %2233 = vmatpush1.bf16.msra.mxu0 %v3447_v42 }
 0x22f   :  { %2234 = vmatprep.subr.bf16.mxu0 %v3452_v43 }
 0x232   :  { %2235 = vmatpush1.bf16.msra.mxu0 %v3450_v45 }
 0x233   :  { %2236 = vmatprep.subr.bf16.mxu0 %v3455_v46 }
 0x236   :  { %2237 = vmatpush1.bf16.msra.mxu0 %v3453_v47 }
 0x237   :  { %2238 = vmatprep.subr.bf16.mxu0 %v3458_v48 }
 0x23a   :  { %2239 = vmatpush1.bf16.msra.mxu0 %v3456_v49 }
 0x23d   :  { %2241 = vmatmul.mubr.bf16.vlgmr.msra.gmra.mrb[4].mxu0 %v1781_v51 }
 0x310   :  { %v2242_v2 = vpop.f32.mrb[4].mxu0 }
 0x311   :  { %v2249_v7 = vrot.slane %v2242_v2, 4  ;;  %v2263_v3 = vmul.f32 %v2242_v2, %v2242_v2  ;;  %v2244_v4 = vpop.f32.mrb[5].mxu0 }
 0x312   :  { %v2255_v5 = vrot.slane %v2244_v4, 4  ;;  %v2264_v6 = vmul.f32 %v2244_v4, %v2244_v4  ;;  %v2246_v8 = vpop.f32.mrb[6].mxu0 }
 0x313   :  { %v2250_v9 = vadd.f32 %v2249_v7, %v2242_v2  ;;  %v2265_v10 = vrot.slane %v2263_v3, 4  ;;  %v2247_v11 = vpop.f32.mrb[7].mxu0 }
 0x314   :  { %v2256_v12 = vadd.f32 %v2255_v5, %v2244_v4  ;;  %v2271_v13 = vrot.slane %v2264_v6, 4  ;;  %v3478_v11 = vld [vmem:[%s4033_s4 + $0x18] sm:$0xff]  }
 0x315   :  { %v2251_v14 = vrot.slane %v2250_v9, 2  ;;  %v2266_v15 = vadd.f32 %v2265_v10, %v2263_v3  ;;  %v3550_v10 = vmov 0.0  }
 0x316   :  { %v2257_v16 = vrot.slane %v2256_v12, 2  ;;  %v2272_v17 = vadd.f32 %v2271_v13, %v2264_v6  ;;  %3015 = vmatprep.subr.bf16.mxu1 %v3550_v10  ;;  %v3480_v13 = vld [vmem:[%s4033_s4 + $0x28] sm:$0xff]  }
 0x317   :  { %v2252_v18 = vadd.f32 %v2251_v14, %v2250_v9  ;;  %v2267_v19 = vrot.slane %v2266_v15, 2  ;;  %v3475_v9 = vld [vmem:[%s4033_s4] sm:$0xff]   ;;  %v3481_v14 = vld [vmem:[%s4033_s4 + $0x30] sm:$0xff]  }
 0x318   :  { %v2258_v20 = vadd.f32 %v2257_v16, %v2256_v12  ;;  %v2273_v21 = vrot.slane %v2272_v17, 2  ;;  %v3479_v12 = vld [vmem:[%s4033_s4 + $0x20] sm:$0xff]  }
 0x319   :  { %v2253_v22 = vrot.slane %v2252_v18, 1  ;;  %v2268_v23 = vadd.f32 %v2267_v19, %v2266_v15  ;;  %v3482_v15 = vld [vmem:[%s4033_s4 + $0x38] sm:$0xff]  }
 0x31a   :  { %v2259_v24 = vrot.slane %v2258_v20, 1  ;;  %v2274_v25 = vadd.f32 %v2273_v21, %v2272_v17 }
 0x31b   :  { %v2254_v26 = vadd.f32 %v2253_v22, %v2252_v18  ;;  %v2269_v27 = vrot.slane %v2268_v23, 1 }
 0x31c   :  { %v2260_v29 = vadd.f32 %v2259_v24, %v2258_v20  ;;  %v2275_v0 = vrot.slane %v2274_v25, 1 }
 0x31d   :  { %v2261_v31 = vmul.f32 0.125, %v2254_v26  ;;  %v2270_v33 = vadd.f32 %v2269_v27, %v2268_v23 }
 0x31e   :  { %v2262_v34 = vmul.f32 0.125, %v2260_v29  ;;  %v2276_v36 = vadd.f32 %v2275_v0, %v2274_v25 }
 0x31f   :  { %v2277_v37 = vmul.f32 0.125, %v2270_v33  ;;  %v2279_v38 = vmul.f32 %v2261_v31, %v2261_v31 }
 0x320   :  { %v2278_v39 = vmul.f32 0.125, %v2276_v36  ;;  %v2280_v41 = vmul.f32 %v2262_v34, %v2262_v34 }
 0x321   :  { %v2281_v42 = vsub.f32 %v2277_v37, %v2279_v38 }
 0x322   :  { %v2282_v43 = vsub.f32 %v2278_v39, %v2280_v41 }
 0x323   :  { %v2283_v45 = vmax.f32 %v2281_v42, 0.0 }
 0x324   :  { %v2284_v46 = vmax.f32 %v2282_v43, 0.0 }
 0x325   :  { %v2286_v47 = vadd.f32 1e-05, %v2283_v45  ;;  %v2547_v45 = vld [vmem:[%s4038_s9] sm:$0x1]  ;;  %s3552_s9 = smov [#allocation5]  }
 0x326   :  { %v2287_v48 = vadd.f32 1e-05, %v2284_v46  ;;  %s2688_s21 = sshll.u32 %s3552_s9, 4  ;;  %s2689_s21 = int_to_ptr.vmem [resolvable:$true] %s2688_s21 }
 0x327   :  { %3491 = vrsqrt.f32 %v2286_v47  ;;  %p3524_p9 = scmp.lt.s32.totalorder %s2689_s21, %s2689_s21 }
 0x328   :  { %3493 = vrsqrt.f32 %v2287_v48  ;;  %v2551_v48 = vld [vmem:[%s4039_s10] sm:$0x1]  ;;  %s3519_s10 = scalar_lea.vmem %s2689_s21, 128 }
 0x329   :  { %p3520_p8 = scmp.ne.s32.totalorder %s2689_s21, %s3519_s10  ;;  %p3525_p10 = scmp.lt.s32.totalorder %s3519_s10, %s3519_s10 }
 0x32b   :  { %p3526_p11 = por %p3525_p10, %p3524_p9 }
 0x32d   :  { %p3527_p12 = pnand %p3526_p11, %p3520_p8 }
 0x331   :  { %v3492_v49 = vpop.eup %3491 }
 0x332   :  { %v3494_v50 = vpop.eup %3493 }
 0x333   :  { %v2292_v51 = vcombine.low %v3492_v49, %v3494_v50 }
 0x335   :  { %v2299_v52 = vrot.slane %v2292_v51, %v3796_v32 }
 0x337   :  { %v2306_v54 = vrot.slane %v2299_v52, %v3796_v32 }
 0x339   :  { %v2308_v55 = vmul.f32 %v2306_v54, %v2285_v53 }
 0x33b   :  { %v2314_v56 = vrot.slane %v2308_v55, %v3803_v40  ;;  %v2318_v57 = vrot.slane %v2308_v55, %v3806_v44 }
 0x33d   :  { %v2321_v58 = vmul.f32 %v2314_v56, %v2261_v31  ;;  %v2322_v59 = vmul.f32 %v2318_v57, %v2262_v34  ;;  %v2343_v60 = vmul.f32 %v2318_v57, %v2244_v4  ;;  %v2342_v62 = vmul.f32 %v2314_v56, %v2242_v2  ;;  %v2975_v57 = vld [vmem:[%s4040_s11] ss:$0 sm:$0xff] }
 0x33f   :  { %v2325_v1 = vcombine.low %v2321_v58, %v2322_v59 }
 0x341   :  { %v2332_v35 = vrot.slane %v2325_v1, %v3796_v32 }
 0x343   :  { %v2339_v30 = vrot.slane %v2332_v35, %v3796_v32  ;;  %v3476_v32 = vld [vmem:[%s4033_s4 + $0x8] sm:$0xff]  }
 0x345   :  { %v2341_v63 = vsub.f32 %v2309_v28, %v2339_v30 }
 0x347   :  { %v2352_v61 = vrot.slane %v2341_v63, %v3806_v44  ;;  %v2348_v7 = vrot.slane %v2341_v63, %v3803_v40  ;;  %v3477_v44 = vld [vmem:[%s4033_s4 + $0x10] sm:$0xff]  }
 0x349   :  { %v2356_v3 = vadd.f32 %v2352_v61, %v2343_v60  ;;  %v2355_v5 = vadd.f32 %v2348_v7, %v2342_v62 }
 0x34b   :  { %v2358_v6 = vmax.f32 %v2356_v3, 0.0  ;;  %v2357_v8 = vmax.f32 %v2355_v5, 0.0 }
 0x34d   :  { %v2360_v4 = vpack.c.bf16 %v2358_v6, %v2358_v6  ;;  %v2359_v2 = vpack.c.bf16 %v2357_v8, %v2357_v8 }
 0x34f   :  { %2521 = vmatprep.mubr.bf16.mxu1 %v2360_v4 }
 0x350   :  { %2522 = vmatmul.mubr.bf16.vlgmr.msra.gmra.mrb[8].mxu1 %v2359_v2 }
 0x351   :  { %3016 = vmatpush3.bf16.msra.mxu1 %v3475_v9  ;;  %3031 = vmatprep.mubr.msk.bf16.mxu1 %vm3551_vm1, %v3550_v10 }
 0x352   :  { %3017 = vmatprep.subr.bf16.mxu1 %v3550_v10 }
 0x355   :  { %3018 = vmatpush3.bf16.msra.mxu1 %v3476_v32 }
 0x356   :  { %3019 = vmatprep.subr.bf16.mxu1 %v3550_v10 }
 0x359   :  { %3020 = vmatpush3.bf16.msra.mxu1 %v3477_v44 }
 0x35a   :  { %3021 = vmatprep.subr.bf16.mxu1 %v3550_v10 }
 0x35d   :  { %3022 = vmatpush3.bf16.msra.mxu1 %v3478_v11 }
 0x35e   :  { %3023 = vmatprep.subr.bf16.mxu1 %v3550_v10 }
 0x361   :  { %3024 = vmatpush3.bf16.msra.mxu1 %v3479_v12 }
 0x362   :  { %3025 = vmatprep.subr.bf16.mxu1 %v3550_v10 }
 0x365   :  { %3026 = vmatpush3.bf16.msra.mxu1 %v3480_v13 }
 0x366   :  { %3027 = vmatprep.subr.bf16.mxu1 %v3550_v10 }
 0x369   :  { %3028 = vmatpush3.bf16.msra.mxu1 %v3481_v14 }
 0x36a   :  { %3029 = vmatprep.subr.bf16.mxu1 %v3550_v10 }
 0x36d   :  { %3030 = vmatpush3.bf16.msra.mxu1 %v3482_v15 }
 0x423   :  { %v3000_v16 = vpop.f32.mrb[8].mxu1 }
 0x424   :  { %v3001_v17 = vpop.f32.mrb[9].mxu1 }
 0x425   :  { %v3002_v18 = vadd.f32 %v3001_v17, %v3000_v16  ;;  %v3003_v19 = vpop.f32.mrb[10].mxu1 }
 0x426   :  { %v3004_v20 = vpop.f32.mrb[11].mxu1 }
 0x427   :  { %v2529_v21 = vrot.slane %v3002_v18, 4  ;;  %v2536_v22 = vmul.f32 %v3002_v18, %v3002_v18 }
 0x429   :  { %v2530_v23 = vadd.f32 %v3002_v18, %v2529_v21  ;;  %v2537_v24 = vrot.slane %v2536_v22, 4 }
 0x42b   :  { %v2531_v25 = vrot.slane %v2530_v23, 2  ;;  %v2538_v26 = vadd.f32 %v2537_v24, %v2536_v22 }
 0x42d   :  { %v2532_v27 = vadd.f32 %v2531_v25, %v2530_v23  ;;  %v2539_v29 = vrot.slane %v2538_v26, 2 }
 0x42f   :  { %v2533_v0 = vrot.slane %v2532_v27, 1  ;;  %v2540_v31 = vadd.f32 %v2539_v29, %v2538_v26 }
 0x431   :  { %v2534_v33 = vadd.f32 %v2533_v0, %v2532_v27  ;;  %v2541_v34 = vrot.slane %v2540_v31, 1 }
 0x433   :  { %v2535_v36 = vmul.f32 0.125, %v2534_v33  ;;  %v2542_v37 = vadd.f32 %v2541_v34, %v2540_v31 }
 0x435   :  { %v2543_v38 = vmul.f32 0.125, %v2542_v37  ;;  %v2544_v39 = vmul.f32 %v2535_v36, %v2535_v36 }
 0x437   :  { %v2545_v41 = vsub.f32 %v2543_v38, %v2544_v39 }
 0x439   :  { %v2546_v42 = vmax.f32 %v2545_v41, 0.0 }
 0x43b   :  { %v2548_v43 = vadd.f32 1e-05, %v2546_v42 }
 0x43d   :  { %3495 = vrsqrt.f32 %v2548_v43 }
 0x447   :  { %v3496_v46 = vpop.eup %3495 }
 0x448   :  { %v2550_v47 = vmul.f32 %v3496_v46, %v2547_v45 }
 0x44a   :  { %v2558_v49 = vrot.slane %v2550_v47, %v3803_v40  ;;  %v2552_v50 = vmul.f32 %v2550_v47, %v2535_v36 }
 0x44c   :  { %v2553_v51 = vsub.f32 %v2551_v48, %v2552_v50  ;;  %v2560_v52 = vmul.f32 %v3002_v18, %v2558_v49 }
 0x44e   :  { %v2565_v53 = vrot.slane %v2553_v51, %v3803_v40 }
 0x450   :  { %v2567_v54 = vadd.f32 %v2565_v53, %v2560_v52 }
 0x452   :  { %v2568_v55 = vmax.f32 %v2567_v54, 0.0 }
 0x454   :  { %v2569_v56 = vpack.c.bf16 %v2568_v55, %v2568_v55 }
 0x456   :  { %3032 = vmatmul.mubr.bf16.vlgmr.msra.gmra.mrb[12].mxu1 %v2569_v56 }
 0x529   :  { %v2675_v58 = vpop.f32.mrb[12].mxu1 }
 0x52a   :  { %v2676_v59 = vadd.f32 %v2975_v57, %v2675_v58  ;;  %v3033_v60 = vpop.f32.mrb[13].mxu1 }
 0x52b   :  { %v2678_v62 = vpop.f32.mrb[14].mxu1 }
 0x52c   :  { %2681 = vst [vmem:[#allocation5] sm:$0xff] %v2676_v59  ;;  %v3034_v1 = vpop.f32.mrb[15].mxu1 }
 0x52d   :  { %3530 = shalt.err (!%p3527_p12)
}
 0x52e   :  { %s3531_s11 = scalar_lea.hbm %s4041_s12, 128 }
 0x52f   :  { %p3532_p13 = scmp.ne.s32.totalorder %s4041_s12, %s3531_s11  ;;  %p3535_p0 = scmp.lt.u32.totalorder %s3531_s11, %s4041_s12 }
 0x531   :  { %p3537_p1 = pnand %p3535_p0, %p3532_p13 }
 0x533   :  { %3540 = shalt.err (!%p3537_p1)
}
 0x534   :  { %2691 = dma.vmem_to_hbm [thread:$0]  %s2689_s21, 128, %s4041_s12, [#allocation4]  }
 0x535   :  { %3543 = dma.done.wait [#allocation4], 128  }
 0x536   :  { %3544 = vsyncadd [#allocation4], 4294967168 }
 0x537   :  { %2695 = vsyncpa [#allocation3], 1 }
 0x538   :  { %2696 = vsyncpa [#allocation4], 1 }

</bundles_post_ra>
